<compile_context>
chip_gen: v7x
topology: tpu7x:2x2x1
jax: 0.10.0
libtpu: 0.0.40
codegen_flags: <defaults>
</compile_context>

<pallas_src>
import jax
import jax.numpy as jnp
import numpy as np
from jax.experimental import pallas as pl
from jax.experimental.pallas import tpu as pltpu

C_MID = 128     # Conv2d(C, 128, 1) output channels (fixed by the module)
C_OUT = 768     # Conv2d(128, 768, 2) output channels (fixed by the module)
BN_EPS = 1e-5
HW = 7          # input spatial size the module's forward supports
LANE = 128


def _round_up(x, m):
    return (x + m - 1) // m * m


def aux_head_kernel(x_ref, wpool_ref, b1_ref, w2_ref, wc_ref, bc_ref, out_ref):
    # x_ref     : (TB, 49*C)   f32   flattened NHWC input tile
    # wpool_ref : (49*C, 512)  bf16  avg-pool mask * 1x1-conv * BN-scale / 25
    # b1_ref    : (1, 512)     f32   BN shift (tiled across the 4 pool taps)
    # w2_ref    : (512, 768)   bf16  2x2 conv weight, 4 taps fused along K
    # wc_ref    : (768, NCp)   bf16  classifier weight, zero-padded to 128 lanes
    # bc_ref    : (1, NCp)     f32   classifier bias, zero-padded
    # out_ref   : (TB, NCp)    f32   padded logits
    x = jnp.maximum(x_ref[...], 0.0)                                   # ReLU
    h = jnp.dot(x.astype(jnp.bfloat16), wpool_ref[...],
                preferred_element_type=jnp.float32)                    # pool + 1x1 conv + BN scale
    h = jnp.maximum(h + b1_ref[...], 0.0)                              # BN shift + ReLU
    z = jnp.dot(h.astype(jnp.bfloat16), w2_ref[...],
                preferred_element_type=jnp.float32)                    # 2x2 conv (taps fused)
    z = jnp.maximum(z, 0.0)                                            # ReLU
    out_ref[...] = (jnp.dot(z.astype(jnp.bfloat16), wc_ref[...],
                            preferred_element_type=jnp.float32)
                    + bc_ref[...])                                     # Linear(768, NC)


def aux_head_forward(x_nchw, params):
    """x_nchw: (B, C, 7, 7) float32 -> logits (B, num_classes)."""
    B, C = x_nchw.shape[0], x_nchw.shape[1]
    num_classes = params["num_classes"]
    ncp = params["wc"].shape[1]                       # 128-lane padded classifier width
    feat = HW * HW * C

    # NCHW -> NHWC -> (B, 49*C): lane axis carries the flattened (h, w, c).
    x_flat = jnp.transpose(x_nchw, (0, 2, 3, 1)).reshape(B, feat).astype(jnp.float32)

    # Batch tile: at least 8 sublane rows for the MXU, capped at 128 per step.
    tb = 128 if B >= 128 else _round_up(max(B, 8), 8)
    b_pad = _round_up(B, tb)
    if b_pad != B:
        x_flat = jnp.pad(x_flat, ((0, b_pad - B), (0, 0)))

    out = pl.pallas_call(
        aux_head_kernel,
        out_shape=jax.ShapeDtypeStruct((b_pad, ncp), jnp.float32),
        grid=(b_pad // tb,),
        in_specs=[
            pl.BlockSpec((tb, feat), lambda i: (i, 0)),           # x tile (pipelined)
            pl.BlockSpec((feat, 4 * C_MID), lambda i: (0, 0)),    # combined pool/conv/BN weight
            pl.BlockSpec((1, 4 * C_MID), lambda i: (0, 0)),       # BN shift
            pl.BlockSpec((4 * C_MID, C_OUT), lambda i: (0, 0)),   # 2x2 conv (fused taps)
            pl.BlockSpec((C_OUT, ncp), lambda i: (0, 0)),         # classifier W (padded)
            pl.BlockSpec((1, ncp), lambda i: (0, 0)),             # classifier b (padded)
        ],
        out_specs=pl.BlockSpec((tb, ncp), lambda i: (i, 0)),
        compiler_params=pltpu.CompilerParams(
            dimension_semantics=("parallel",)),
    )(x_flat, params["wpool"], params["b1"], params["w2"],
      params["wc"], params["bc"])
    return out[:B, :num_classes]


def make_params(key, C, num_classes):
    ks = jax.random.split(key, 8)
    # PyTorch-layout parameters.
    w1_t = jax.random.normal(ks[0], (C_MID, C), jnp.float32) * 0.1            # Conv2d(C,128,1).weight[:,:,0,0]
    gamma = 1.0 + 0.1 * jax.random.normal(ks[1], (C_MID,), jnp.float32)
    beta = 0.1 * jax.random.normal(ks[2], (C_MID,), jnp.float32)
    mean = 0.1 * jax.random.normal(ks[3], (C_MID,), jnp.float32)
    var = 0.5 + 0.1 * jnp.abs(jax.random.normal(ks[4], (C_MID,), jnp.float32))
    w2_t = jax.random.normal(ks[5], (C_OUT, C_MID, 2, 2), jnp.float32) * 0.05  # Conv2d(128,768,2).weight
    wc_t = jax.random.normal(ks[6], (num_classes, C_OUT), jnp.float32) * 0.05  # Linear.weight
    bc_t = 0.1 * jax.random.normal(ks[7], (num_classes,), jnp.float32)         # Linear.bias

    # ---- fold eval-mode BN and the 1/25 avg-pool factor into the 1x1 conv --
    scale = gamma * jax.lax.rsqrt(var + BN_EPS)                 # (128,)
    shift = beta - mean * scale                                 # (128,)
    w1_eff = jnp.transpose(w1_t) * (scale / 25.0)[None, :]      # (C, 128)

    # ---- bake the 4 overlapping 5x5 pooling windows into one matmul weight -
    # row = (h*7 + w)*C + c, col = p*128 + o, p = oh*2 + ow
    pool_mask = np.zeros((HW * HW, 4), np.float32)
    for p, (oh, ow) in enumerate([(0, 0), (0, 1), (1, 0), (1, 1)]):
        for h in range(oh * 2, oh * 2 + 5):
            for w in range(ow * 2, ow * 2 + 5):
                pool_mask[h * HW + w, p] = 1.0
    wpool = jnp.einsum("sp,co->scpo", jnp.asarray(pool_mask), w1_eff)
    wpool = wpool.reshape(HW * HW * C, 4 * C_MID)
    b1 = jnp.tile(shift, 4).reshape(1, 4 * C_MID)

    # ---- 2x2 conv: fuse the 4 taps along K (row = (kh*2+kw)*128 + ci) ------
    w2_k = jnp.transpose(w2_t, (2, 3, 1, 0)).reshape(4 * C_MID, C_OUT)

    # ---- classifier padded to a lane-dense 128-wide output -----------------
    ncp = _round_up(num_classes, LANE)
    wc_p = jnp.zeros((C_OUT, ncp), jnp.float32).at[:, :num_classes].set(jnp.transpose(wc_t))
    bc_p = jnp.zeros((1, ncp), jnp.float32).at[0, :num_classes].set(bc_t)

    params = dict(
        wpool=wpool.astype(jnp.bfloat16),
        b1=b1,
        w2=w2_k.astype(jnp.bfloat16),
        wc=wc_p.astype(jnp.bfloat16),
        bc=bc_p,
        num_classes=num_classes,
    )
    torch_params = dict(w1=w1_t, gamma=gamma, beta=beta, mean=mean, var=var,
                        w2=w2_t, wc=wc_t, bc=bc_t)
    return params, torch_params


def reference_forward(x_nchw, tp):
    """Pure-JAX f32 reference replicating the PyTorch module (eval-mode BN)."""
    xr = jnp.maximum(x_nchw, 0.0)                                      # ReLU
    pools = []
    for oh in range(2):
        row = []
        for ow in range(2):
            row.append(jnp.mean(xr[:, :, oh * 2:oh * 2 + 5, ow * 2:ow * 2 + 5],
                                axis=(2, 3)))                          # (B, C)
        pools.append(jnp.stack(row, axis=-1))                          # (B, C, 2)
    pooled = jnp.stack(pools, axis=-2)                                 # (B, C, 2, 2)
    h = jnp.einsum("bchw,oc->bohw", pooled, tp["w1"])                  # 1x1 conv
    scale = tp["gamma"] / jnp.sqrt(tp["var"] + BN_EPS)
    shift = tp["beta"] - tp["mean"] * scale
    h = h * scale[None, :, None, None] + shift[None, :, None, None]    # BN (eval)
    h = jnp.maximum(h, 0.0)                                            # ReLU
    z = jnp.einsum("bchw,ochw->bo", h, tp["w2"])                       # 2x2 conv -> (B, 768)
    z = jnp.maximum(z, 0.0)                                            # ReLU
    return z @ tp["wc"].T + tp["bc"]                                   # Linear


if __name__ == "__main__":
    B, C = 2, 8
    num_classes = 10

    key = jax.random.PRNGKey(0)
    kx, kp = jax.random.split(key)
    x = jax.random.normal(kx, (B, C, HW, HW), jnp.float32)
    params, torch_params = make_params(kp, C, num_classes)

    out = jax.block_until_ready(aux_head_forward(x, params))
    ref = jax.block_until_ready(reference_forward(x, torch_params))

    assert out.shape == (B, num_classes)
    # bf16 matmul inputs with f32 accumulation -> loosened tolerance vs f32 ref.
    np.testing.assert_allclose(np.asarray(out), np.asarray(ref), rtol=2e-2, atol=2e-2)
    print("KERNEL_OK")
</pallas_src>

<mosaic_0001>
module attributes {stable_mosaic.version = 11 : i64} {
  func.func @aux_head_kernel(%arg0: i32, %arg1: memref<8x392xf32, #tpu.memory_space<vmem>>, %arg2: memref<392x512xbf16, #tpu.memory_space<vmem>>, %arg3: memref<1x512xf32, #tpu.memory_space<vmem>>, %arg4: memref<512x768xbf16, #tpu.memory_space<vmem>>, %arg5: memref<768x128xbf16, #tpu.memory_space<vmem>>, %arg6: memref<1x128xf32, #tpu.memory_space<vmem>>, %arg7: memref<8x128xf32, #tpu.memory_space<vmem>>) attributes {dimension_semantics = [#tpu.dimension_semantics<parallel>], iteration_bounds = array<i64: 1>, scalar_prefetch = 0 : i64, scratch_operands = 0 : i64, tpu.core_type = #tpu.core_type<tc>, window_params = [{transform_indices = @transform_0, window_bounds = array<i64: 8, 392>}, {pipeline_mode = #tpu.pipeline_mode<synchronous>, transform_indices = @transform_1, window_bounds = array<i64: 392, 512>}, {pipeline_mode = #tpu.pipeline_mode<synchronous>, transform_indices = @transform_2, window_bounds = array<i64: 1, 512>}, {pipeline_mode = #tpu.pipeline_mode<synchronous>, transform_indices = @transform_3, window_bounds = array<i64: 512, 768>}, {pipeline_mode = #tpu.pipeline_mode<synchronous>, transform_indices = @transform_4, window_bounds = array<i64: 768, 128>}, {pipeline_mode = #tpu.pipeline_mode<synchronous>, transform_indices = @transform_5, window_bounds = array<i64: 1, 128>}, {transform_indices = @transform_6, window_bounds = array<i64: 8, 128>}]} {
    %c0 = arith.constant 0 : index
    %c0_0 = arith.constant 0 : index
    %0 = vector.load %arg1[%c0, %c0_0] : memref<8x392xf32, #tpu.memory_space<vmem>>, vector<8x392xf32>
    %cst = arith.constant 0.000000e+00 : f32
    %1 = vector.broadcast %cst : f32 to vector<8x392xf32>
    %2 = arith.maximumf %0, %1 : vector<8x392xf32>
    %3 = arith.truncf %2 : vector<8x392xf32> to vector<8x392xbf16>
    %c0_1 = arith.constant 0 : index
    %c0_2 = arith.constant 0 : index
    %4 = vector.load %arg2[%c0_1, %c0_2] : memref<392x512xbf16, #tpu.memory_space<vmem>>, vector<392x512xbf16>
    %cst_3 = arith.constant dense<0.000000e+00> : vector<8x512xf32>
    %5 = tpu.matmul %3, %4, %cst_3 {dimension_numbers = #tpu.dot_dimension_numbers<[1], [0], [0], [1], [0, 0, 1, 1], [], []>} : vector<8x392xbf16>, vector<392x512xbf16>, vector<8x512xf32> -> vector<8x512xf32>
    %c0_4 = arith.constant 0 : index
    %c0_5 = arith.constant 0 : index
    %6 = vector.load %arg3[%c0_4, %c0_5] : memref<1x512xf32, #tpu.memory_space<vmem>>, vector<1x512xf32>
    %7 = vector.broadcast %6 : vector<1x512xf32> to vector<8x512xf32>
    %8 = arith.addf %5, %7 : vector<8x512xf32>
    %cst_6 = arith.constant 0.000000e+00 : f32
    %9 = vector.broadcast %cst_6 : f32 to vector<8x512xf32>
    %10 = arith.maximumf %8, %9 : vector<8x512xf32>
    %11 = arith.truncf %10 : vector<8x512xf32> to vector<8x512xbf16>
    %c0_7 = arith.constant 0 : index
    %c0_8 = arith.constant 0 : index
    %12 = vector.load %arg4[%c0_7, %c0_8] : memref<512x768xbf16, #tpu.memory_space<vmem>>, vector<512x768xbf16>
    %cst_9 = arith.constant dense<0.000000e+00> : vector<8x768xf32>
    %13 = tpu.matmul %11, %12, %cst_9 {dimension_numbers = #tpu.dot_dimension_numbers<[1], [0], [0], [1], [0, 0, 1, 1], [], []>} : vector<8x512xbf16>, vector<512x768xbf16>, vector<8x768xf32> -> vector<8x768xf32>
    %cst_10 = arith.constant 0.000000e+00 : f32
    %14 = vector.broadcast %cst_10 : f32 to vector<8x768xf32>
    %15 = arith.maximumf %13, %14 : vector<8x768xf32>
    %16 = arith.truncf %15 : vector<8x768xf32> to vector<8x768xbf16>
    %c0_11 = arith.constant 0 : index
    %c0_12 = arith.constant 0 : index
    %17 = vector.load %arg5[%c0_11, %c0_12] : memref<768x128xbf16, #tpu.memory_space<vmem>>, vector<768x128xbf16>
    %cst_13 = arith.constant dense<0.000000e+00> : vector<8x128xf32>
    %18 = tpu.matmul %16, %17, %cst_13 {dimension_numbers = #tpu.dot_dimension_numbers<[1], [0], [0], [1], [0, 0, 1, 1], [], []>} : vector<8x768xbf16>, vector<768x128xbf16>, vector<8x128xf32> -> vector<8x128xf32>
    %c0_14 = arith.constant 0 : index
    %c0_15 = arith.constant 0 : index
    %19 = vector.load %arg6[%c0_14, %c0_15] : memref<1x128xf32, #tpu.memory_space<vmem>>, vector<1x128xf32>
    %20 = vector.broadcast %19 : vector<1x128xf32> to vector<8x128xf32>
    %21 = arith.addf %18, %20 : vector<8x128xf32>
    %c0_16 = arith.constant 0 : index
    %c0_17 = arith.constant 0 : index
    %22 = vector.load %arg7[%c0_16, %c0_17] : memref<8x128xf32, #tpu.memory_space<vmem>>, vector<8x128xf32>
    tpu.vector_store %arg7[%c0_16, %c0_17], %21 {strides = array<i32>} : memref<8x128xf32, #tpu.memory_space<vmem>>, vector<8x128xf32>,
    return
  }
  func.func @transform_0(%arg0: i32) -> (i32, i32) {
    %c0_i32 = arith.constant 0 : i32
    %c0_i32_0 = arith.constant 0 : i32
    return %arg0, %c0_i32 : i32, i32
  }
  func.func @transform_1(%arg0: i32) -> (i32, i32) {
    %c0_i32 = arith.constant 0 : i32
    %c0_i32_0 = arith.constant 0 : i32
    %c0_i32_1 = arith.constant 0 : i32
    return %c0_i32, %c0_i32_0 : i32, i32
  }
  func.func @transform_2(%arg0: i32) -> (i32, i32) {
    %c0_i32 = arith.constant 0 : i32
    %c0_i32_0 = arith.constant 0 : i32
    %c0_i32_1 = arith.constant 0 : i32
    return %c0_i32, %c0_i32_0 : i32, i32
  }
  func.func @transform_3(%arg0: i32) -> (i32, i32) {
    %c0_i32 = arith.constant 0 : i32
    %c0_i32_0 = arith.constant 0 : i32
    %c0_i32_1 = arith.constant 0 : i32
    return %c0_i32, %c0_i32_0 : i32, i32
  }
  func.func @transform_4(%arg0: i32) -> (i32, i32) {
    %c0_i32 = arith.constant 0 : i32
    %c0_i32_0 = arith.constant 0 : i32
    %c0_i32_1 = arith.constant 0 : i32
    return %c0_i32, %c0_i32_0 : i32, i32
  }
  func.func @transform_5(%arg0: i32) -> (i32, i32) {
    %c0_i32 = arith.constant 0 : i32
    %c0_i32_0 = arith.constant 0 : i32
    %c0_i32_1 = arith.constant 0 : i32
    return %c0_i32, %c0_i32_0 : i32, i32
  }
  func.func @transform_6(%arg0: i32) -> (i32, i32) {
    %c0_i32 = arith.constant 0 : i32
    %c0_i32_0 = arith.constant 0 : i32
    return %arg0, %c0_i32 : i32, i32
  }
}

</mosaic_0001>

<bundles_post_ra>
// kernel: tpu_custom_call.1
= control target key start
LH: loop header
LB: loop body
LE: loop exit
PB: predicated region body
PF: predicated region fallthrough
CT: control target
= control target key end

     0   :  { %11 = vsyncpa [#allocation3], 0  ;;  %s4029_s0 = inlined_call_operand.hbm [shape: f32[8,392], index: 0, kind: input, shape index: {}]   ;;  %s4030_s1 = inlined_call_operand.hbm [shape: bf16[392,512], index: 1, kind: input, shape index: {}]   ;;  %s4031_s2 = inlined_call_operand.vmem [shape: f32[1,512], index: 2, kind: input, shape index: {}]   ;;  %s4032_s3 = inlined_call_operand.hbm [shape: bf16[512,768], index: 3, kind: input, shape index: {}]   ;;  %s4033_s4 = inlined_call_operand.hbm [shape: bf16[768,128], index: 4, kind: input, shape index: {}]   ;;  %s4034_s5 = inlined_call_operand.vmem [shape: f32[1,128], index: 5, kind: input, shape index: {}]   ;;  %s4035_s6 = inlined_call_operand.hbm [shape: f32[8,128], index: 6, kind: output, shape index: {}]  }
   0x1   :  { %12 = vsyncpa [#allocation6], 0 }
   0x2   :  { %13 = vsyncpa [#allocation9], 0 }
   0x3   :  { %14 = vsyncpa [#allocation4], 0  ;;  %s3876_s21 = smov [#allocation5]   ;;  %s3758_s25 = scalar_lea.hbm %s4030_s1, 12544 }
   0x4   :  { %s30_s22 = sshll.u32 %s3876_s21, 4  ;;  %p3759_p0 = scmp.ne.s32.totalorder %s4030_s1, %s3758_s25  ;;  %s31_s22 = int_to_ptr.vmem [resolvable:$true] %s30_s22 }
   0x5   :  { %p3762_p1 = scmp.lt.u32.totalorder %s3758_s25, %s4030_s1 }
   0x7   :  { %p3764_p2 = pnand %p3762_p1, %p3759_p0 }
   0x9   :  { %3767 = shalt.err (!%p3764_p2)
}
   0xa   :  { %s3768_s30 = scalar_lea.vmem %s31_s22, 12544  ;;  %p3773_p4 = scmp.lt.s32.totalorder %s31_s22, %s31_s22 }
   0xb   :  { %p3769_p3 = scmp.ne.s32.totalorder %s31_s22, %s3768_s30  ;;  %p3774_p5 = scmp.lt.s32.totalorder %s3768_s30, %s3768_s30 }
   0xd   :  { %p3775_p6 = por %p3774_p5, %p3773_p4 }
   0xf   :  { %p3776_p7 = pnand %p3775_p6, %p3769_p3 }
  0x11   :  { %3779 = shalt.err (!%p3776_p7)
}
  0x12   :  { %s3877_s7 = smov 256   ;;  %s3878_s8 = smov 16  }
  0x13   :  { %36 = dma.hbm_to_vmem [thread:$0]  %s4030_s1, 12544, %s31_s22, [#allocation6], %s3877_s7, %s3877_s7, %s3878_s8  }
  0x14   :  { %s3879_s11 = smov [#allocation2]   ;;  %s3880_s13 = smov [#allocation7]  }
  0x15   :  { %s21_s12 = sshll.u32 %s3879_s11, 4  ;;  %s44_s14 = sshll.u32 %s3880_s13, 4  ;;  %s22_s12 = int_to_ptr.vmem [resolvable:$true] %s21_s12  ;;  %s45_s14 = int_to_ptr.vmem [resolvable:$true] %s44_s14 }
  0x16   :  { %s3780_s17 = scalar_lea.hbm %s4029_s0, 512 }
  0x17   :  { %p3781_p8 = scmp.ne.s32.totalorder %s4029_s0, %s3780_s17  ;;  %p3784_p9 = scmp.lt.u32.totalorder %s3780_s17, %s4029_s0 }
  0x19   :  { %p3786_p10 = pnand %p3784_p9, %p3781_p8 }
  0x1b   :  { %3789 = shalt.err (!%p3786_p10)
}
  0x1c   :  { %s3790_s1 = scalar_lea.vmem %s22_s12, 512  ;;  %p3795_p12 = scmp.lt.s32.totalorder %s22_s12, %s22_s12 }
  0x1d   :  { %p3791_p11 = scmp.ne.s32.totalorder %s22_s12, %s3790_s1  ;;  %p3796_p13 = scmp.lt.s32.totalorder %s3790_s1, %s3790_s1 }
  0x1f   :  { %p3797_p0 = por %p3796_p13, %p3795_p12 }
  0x21   :  { %p3798_p1 = pnand %p3797_p0, %p3791_p11 }
  0x23   :  { %3801 = shalt.err (!%p3798_p1)
}
  0x24   :  { %24 = dma.hbm_to_vmem [thread:$0]  %s4029_s0, 512, %s22_s12, [#allocation3]  }
  0x25   :  { %s3802_s26 = scalar_lea.hbm %s4032_s3, 24576 }
  0x26   :  { %p3803_p2 = scmp.ne.s32.totalorder %s4032_s3, %s3802_s26  ;;  %p3806_p3 = scmp.lt.u32.totalorder %s3802_s26, %s4032_s3 }
  0x28   :  { %p3808_p4 = pnand %p3806_p3, %p3803_p2 }
  0x2a   :  { %3811 = shalt.err (!%p3808_p4)
}
  0x2b   :  { %s3812_s7 = scalar_lea.vmem %s45_s14, 24576  ;;  %p3817_p6 = scmp.lt.s32.totalorder %s45_s14, %s45_s14 }
  0x2c   :  { %p3813_p5 = scmp.ne.s32.totalorder %s45_s14, %s3812_s7  ;;  %p3818_p7 = scmp.lt.s32.totalorder %s3812_s7, %s3812_s7 }
  0x2e   :  { %p3819_p8 = por %p3818_p7, %p3817_p6 }
  0x30   :  { %p3820_p9 = pnand %p3819_p8, %p3813_p5 }
  0x32   :  { %3823 = shalt.err (!%p3820_p9)
}
  0x33   :  { %s3881_s0 = smov 384   ;;  %s3882_s8 = smov 24  }
  0x34   :  { %50 = dma.hbm_to_vmem [thread:$0]  %s4032_s3, 24576, %s45_s14, [#allocation6], %s3881_s0, %s3881_s0, %s3882_s8  }
  0x35   :  { %s3883_s11 = smov [#allocation8]   ;;  %s3824_s16 = scalar_lea.hbm %s4033_s4, 6144 }
  0x36   :  { %s56_s12 = sshll.u32 %s3883_s11, 4  ;;  %p3825_p10 = scmp.ne.s32.totalorder %s4033_s4, %s3824_s16  ;;  %s57_s12 = int_to_ptr.vmem [resolvable:$true] %s56_s12 }
  0x37   :  { %p3828_p11 = scmp.lt.u32.totalorder %s3824_s16, %s4033_s4 }
  0x39   :  { %p3830_p12 = pnand %p3828_p11, %p3825_p10 }
  0x3b   :  { %3833 = shalt.err (!%p3830_p12)
}
  0x3c   :  { %s3834_s21 = scalar_lea.vmem %s57_s12, 6144  ;;  %p3839_p0 = scmp.lt.s32.totalorder %s57_s12, %s57_s12 }
  0x3d   :  { %p3835_p13 = scmp.ne.s32.totalorder %s57_s12, %s3834_s21  ;;  %p3840_p1 = scmp.lt.s32.totalorder %s3834_s21, %s3834_s21 }
  0x3f   :  { %p3841_p2 = por %p3840_p1, %p3839_p0 }
  0x41   :  { %p3842_p3 = pnand %p3841_p2, %p3835_p13 }
  0x43   :  { %3845 = shalt.err (!%p3842_p3)
}
  0x44   :  { %s3884_s3 = smov 64   ;;  %s3885_s14 = smov 4  }
  0x45   :  { %62 = dma.hbm_to_vmem [thread:$0]  %s4033_s4, 6144, %s57_s12, [#allocation9], %s3884_s3, %s3884_s3, %s3885_s14  }
  0x46   :  { %3868 = dma.done.wait [#allocation3], 512  }
  0x47   :  { %3869 = vsyncadd [#allocation3], 4294966784 }
  0x48   :  { %3870 = dma.done.wait [#allocation6], 37120  }
  0x49   :  { %3871 = vsyncadd [#allocation6], 4294930176 }
  0x4a   :  { %3872 = dma.done.wait [#allocation9], 6144  }
  0x4b   :  { %3873 = vsyncadd [#allocation9], 4294961152  ;;  %v3274_v0 = vld [vmem:[#allocation5 + $0x4] ss:$16 sps:$4 sm:$0xff]   ;;  %v3276_v1 = vld [vmem:[#allocation5] ss:$16 sps:$4 sm:$0xff]  }
  0x4c   :  { %717 = vmatprep.subr.bf16.mxu0 %v3274_v0  ;;  %v3277_v2 = vld [vmem:[#allocation5 + $0x24] ss:$16 sps:$4 sm:$0xff]   ;;  %v3279_v3 = vld [vmem:[#allocation5 + $0x20] ss:$16 sps:$4 sm:$0xff]   ;;  %v3295_v7 = vld [vmem:[#allocation5 + $0xc] ss:$16 sps:$4 sm:$0xff]  }
  0x4d   :  { %718 = vmatpush1.bf16.msra.mxu0 %v3276_v1  ;;  %v3280_v4 = vld [vmem:[#allocation5 + $0x44] ss:$16 sps:$4 sm:$0xff]   ;;  %v3282_v5 = vld [vmem:[#allocation5 + $0x40] ss:$16 sps:$4 sm:$0xff]   ;;  %v3297_v8 = vld [vmem:[#allocation5 + $0x8] ss:$16 sps:$4 sm:$0xff]   ;;  %799 = vmatprep.subr.bf16.mxu1 %v3295_v7 }
  0x4e   :  { %719 = vmatprep.subr.bf16.mxu0 %v3277_v2  ;;  %v3283_v6 = vld [vmem:[#allocation5 + $0x64] ss:$16 sps:$4 sm:$0xff]   ;;  %v3285_v9 = vld [vmem:[#allocation5 + $0x60] ss:$16 sps:$4 sm:$0xff]   ;;  %v3301_v11 = vld [vmem:[#allocation5 + $0x2c] ss:$16 sps:$4 sm:$0xff]   ;;  %800 = vmatpush1.bf16.msra.mxu1 %v3297_v8 }
  0x4f   :  { %v3286_v10 = vld [vmem:[#allocation5 + $0x84] ss:$16 sps:$4 sm:$0xff]   ;;  %v3303_v12 = vld [vmem:[#allocation5 + $0x28] ss:$16 sps:$4 sm:$0xff]   ;;  %801 = vmatprep.subr.bf16.mxu1 %v3301_v11  ;;  %v3288_v13 = vld [vmem:[#allocation5 + $0x80] ss:$16 sps:$4 sm:$0xff]  }
  0x50   :  { %v3307_v14 = vld [vmem:[#allocation5 + $0x4c] ss:$16 sps:$4 sm:$0xff]   ;;  %v3289_v15 = vld [vmem:[#allocation5 + $0xa4] ss:$16 sps:$4 sm:$0xff]   ;;  %v3309_v16 = vld [vmem:[#allocation5 + $0x48] ss:$16 sps:$4 sm:$0xff]  }
  0x51   :  { %720 = vmatpush1.bf16.msra.mxu0 %v3279_v3  ;;  %v3313_v17 = vld [vmem:[#allocation5 + $0x6c] ss:$16 sps:$4 sm:$0xff]   ;;  %v3291_v18 = vld [vmem:[#allocation5 + $0xa0] ss:$16 sps:$4 sm:$0xff]   ;;  %v3292_v19 = vld [vmem:[#allocation5 + $0xc4] ss:$16 sps:$4 sm:$0xff]  }
  0x52   :  { %721 = vmatprep.subr.bf16.mxu0 %v3280_v4  ;;  %802 = vmatpush1.bf16.msra.mxu1 %v3303_v12  ;;  %v3315_v20 = vld [vmem:[#allocation5 + $0x68] ss:$16 sps:$4 sm:$0xff]   ;;  %v3319_v21 = vld [vmem:[#allocation5 + $0x8c] ss:$16 sps:$4 sm:$0xff]   ;;  %v3294_v22 = vld [vmem:[#allocation5 + $0xc0] ss:$16 sps:$4 sm:$0xff]  }
  0x53   :  { %803 = vmatprep.subr.bf16.mxu1 %v3307_v14  ;;  %v3298_v23 = vld [vmem:[#allocation5 + $0xe4] ss:$16 sps:$4 sm:$0xff]   ;;  %v3321_v24 = vld [vmem:[#allocation5 + $0x88] ss:$16 sps:$4 sm:$0xff]   ;;  %v3325_v25 = vld [vmem:[#allocation5 + $0xac] ss:$16 sps:$4 sm:$0xff]  }
  0x54   :  { %v3300_v26 = vld [vmem:[#allocation5 + $0xe0] ss:$16 sps:$4 sm:$0xff]   ;;  %v3304_v27 = vld [vmem:[#allocation5 + $0x104] ss:$16 sps:$4 sm:$0xff]   ;;  %v3327_v28 = vld [vmem:[#allocation5 + $0xa8] ss:$16 sps:$4 sm:$0xff]  }
  0x55   :  { %722 = vmatpush1.bf16.msra.mxu0 %v3282_v5  ;;  %v3331_v29 = vld [vmem:[#allocation5 + $0xcc] ss:$16 sps:$4 sm:$0xff]   ;;  %v3306_v30 = vld [vmem:[#allocation5 + $0x100] ss:$16 sps:$4 sm:$0xff]   ;;  %v3310_v31 = vld [vmem:[#allocation5 + $0x124] ss:$16 sps:$4 sm:$0xff]  }
  0x56   :  { %723 = vmatprep.subr.bf16.mxu0 %v3283_v6  ;;  %804 = vmatpush1.bf16.msra.mxu1 %v3309_v16  ;;  %v3333_v32 = vld [vmem:[#allocation5 + $0xc8] ss:$16 sps:$4 sm:$0xff]   ;;  %v3337_v33 = vld [vmem:[#allocation5 + $0xec] ss:$16 sps:$4 sm:$0xff]   ;;  %v3312_v35 = vld [vmem:[#allocation5 + $0x120] ss:$16 sps:$4 sm:$0xff]  }
  0x57   :  { %805 = vmatprep.subr.bf16.mxu1 %v3313_v17  ;;  %v79_v34 = vld [vmem:[#allocation2 + $0x8] sm:$0xff]  ;;  %v3316_v37 = vld [vmem:[#allocation5 + $0x144] ss:$16 sps:$4 sm:$0xff]   ;;  %v3318_v41 = vld [vmem:[#allocation5 + $0x140] ss:$16 sps:$4 sm:$0xff]   ;;  %vm700_vm0 = vcmask 64512  }
  0x58   :  { %v83_v36 = vmax.f32 %v79_v34, 0.0  ;;  %v3339_v38 = vld [vmem:[#allocation5 + $0xe8] ss:$16 sps:$4 sm:$0xff]   ;;  %v3343_v40 = vld [vmem:[#allocation5 + $0x10c] ss:$16 sps:$4 sm:$0xff]   ;;  %v78_v58 = vld [vmem:[#allocation2] sm:$0xff] }
  0x59   :  { %724 = vmatpush1.bf16.msra.mxu0 %v3285_v9  ;;  %v3322_v42 = vld [vmem:[#allocation5 + $0x164] ss:$16 sps:$4 sm:$0xff]   ;;  %v3345_v43 = vld [vmem:[#allocation5 + $0x108] ss:$16 sps:$4 sm:$0xff]   ;;  %v3349_v44 = vld [vmem:[#allocation5 + $0x12c] ss:$16 sps:$4 sm:$0xff]  }
  0x5a   :  { %725 = vmatprep.subr.bf16.mxu0 %v3286_v10  ;;  %806 = vmatpush1.bf16.msra.mxu1 %v3315_v20  ;;  %v87_v39 = vpack.c.bf16 %v83_v36, %v83_v36  ;;  %v3324_v45 = vld [vmem:[#allocation5 + $0x160] ss:$16 sps:$4 sm:$0xff]   ;;  %v3328_v46 = vld [vmem:[#allocation5 + $0x184] ss:$16 sps:$4 sm:$0xff]   ;;  %v3351_v47 = vld [vmem:[#allocation5 + $0x128] ss:$16 sps:$4 sm:$0xff]  }
  0x5b   :  { %807 = vmatprep.subr.bf16.mxu1 %v3319_v21  ;;  %v3355_v48 = vld [vmem:[#allocation5 + $0x14c] ss:$16 sps:$4 sm:$0xff]   ;;  %v3330_v49 = vld [vmem:[#allocation5 + $0x180] ss:$16 sps:$4 sm:$0xff]   ;;  %v3334_v50 = vld [vmem:[#allocation5 + $0x1a4] ss:$16 sps:$4 sm:$0xff]  }
  0x5c   :  { %749 = vmatprep.mubr.bf16.mxu0 %v87_v39  ;;  %831 = vmatprep.mubr.bf16.mxu1 %v87_v39  ;;  %v3357_v51 = vld [vmem:[#allocation5 + $0x148] ss:$16 sps:$4 sm:$0xff]   ;;  %v3361_v52 = vld [vmem:[#allocation5 + $0x16c] ss:$16 sps:$4 sm:$0xff]   ;;  %v3336_v53 = vld [vmem:[#allocation5 + $0x1a0] ss:$16 sps:$4 sm:$0xff]  }
  0x5d   :  { %726 = vmatpush1.bf16.msra.mxu0 %v3288_v13  ;;  %v3340_v54 = vld [vmem:[#allocation5 + $0x1c4] ss:$16 sps:$4 sm:$0xff]   ;;  %v3342_v55 = vld [vmem:[#allocation5 + $0x1c0] ss:$16 sps:$4 sm:$0xff]   ;;  %v3363_v56 = vld [vmem:[#allocation5 + $0x168] ss:$16 sps:$4 sm:$0xff]  }
  0x5e   :  { %727 = vmatprep.subr.bf16.mxu0 %v3289_v15  ;;  %808 = vmatpush1.bf16.msra.mxu1 %v3321_v24  ;;  %v3367_v57 = vld [vmem:[#allocation5 + $0x18c] ss:$16 sps:$4 sm:$0xff]   ;;  %v3346_v59 = vld [vmem:[#allocation5 + $0x1e4] ss:$16 sps:$4 sm:$0xff]   ;;  %v3369_v60 = vld [vmem:[#allocation5 + $0x188] ss:$16 sps:$4 sm:$0xff]  }
  0x5f   :  { %809 = vmatprep.subr.bf16.mxu1 %v3325_v25  ;;  %v3348_v61 = vld [vmem:[#allocation5 + $0x1e0] ss:$16 sps:$4 sm:$0xff]   ;;  %v82_v62 = vmax.f32 %v78_v58, 0.0  ;;  %v3373_v63 = vld [vmem:[#allocation5 + $0x1ac] ss:$16 sps:$4 sm:$0xff]   ;;  %vm704_vm1 = vcmask 1043456  }
  0x60   :  { %v81_v0 = vld [vmem:[#allocation2 + $0x18] sm:$0xff]  ;;  %v3354_v2 = vld [vmem:[#allocation5 + $0x204] ss:$16 sps:$4 sm:$0xff]   ;;  %v3352_v6 = vld [vmem:[#allocation5 + $0x200] ss:$16 sps:$4 sm:$0xff]   ;;  %s3886_s25 = smov [#allocation10]  }
  0x61   :  { %728 = vmatpush1.bf16.msra.mxu0 %v3291_v18  ;;  %v85_v1 = vmax.f32 %v81_v0, 0.0  ;;  %v3375_v3 = vld [vmem:[#allocation5 + $0x1a8] ss:$16 sps:$4 sm:$0xff]   ;;  %v86_v4 = vpack.c.bf16 %v82_v62, %v82_v62  ;;  %v3379_v5 = vld [vmem:[#allocation5 + $0x1cc] ss:$16 sps:$4 sm:$0xff]   ;;  %v186_v34 = vld [vmem:[#allocation5 + $0x300] sm:$0xff] }
  0x62   :  { %729 = vmatprep.subr.bf16.mxu0 %v3292_v19  ;;  %810 = vmatpush1.bf16.msra.mxu1 %v3327_v28  ;;  %v3360_v8 = vld [vmem:[#allocation5 + $0x224] ss:$16 sps:$4 sm:$0xff]   ;;  %v3381_v9 = vld [vmem:[#allocation5 + $0x1c8] ss:$16 sps:$4 sm:$0xff]   ;;  %v3385_v10 = vld [vmem:[#allocation5 + $0x1ec] ss:$16 sps:$4 sm:$0xff]   ;;  %v2924_v39 = vcombine.low %v186_v34, %v186_v34 }
  0x63   :  { %811 = vmatprep.subr.bf16.mxu1 %v3331_v29  ;;  %v89_v7 = vpack.c.bf16 %v85_v1, %v85_v1  ;;  %v3358_v11 = vld [vmem:[#allocation5 + $0x220] ss:$16 sps:$4 sm:$0xff]   ;;  %v3366_v12 = vld [vmem:[#allocation5 + $0x244] ss:$16 sps:$4 sm:$0xff]   ;;  %v3387_v13 = vld [vmem:[#allocation5 + $0x1e8] ss:$16 sps:$4 sm:$0xff]  }
  0x64   :  { %v3393_v14 = vld [vmem:[#allocation5 + $0x20c] ss:$16 sps:$4 sm:$0xff]   ;;  %v3364_v15 = vld [vmem:[#allocation5 + $0x240] ss:$16 sps:$4 sm:$0xff]   ;;  %v3372_v16 = vld [vmem:[#allocation5 + $0x264] ss:$16 sps:$4 sm:$0xff]  }
  0x65   :  { %730 = vmatpush1.bf16.msra.mxu0 %v3294_v22  ;;  %v3391_v17 = vld [vmem:[#allocation5 + $0x208] ss:$16 sps:$4 sm:$0xff]   ;;  %v3399_v18 = vld [vmem:[#allocation5 + $0x22c] ss:$16 sps:$4 sm:$0xff]   ;;  %v3370_v19 = vld [vmem:[#allocation5 + $0x260] ss:$16 sps:$4 sm:$0xff]  }
  0x66   :  { %731 = vmatprep.subr.bf16.mxu0 %v3298_v23  ;;  %812 = vmatpush1.bf16.msra.mxu1 %v3333_v32  ;;  %v3378_v20 = vld [vmem:[#allocation5 + $0x284] ss:$16 sps:$4 sm:$0xff]   ;;  %v3397_v21 = vld [vmem:[#allocation5 + $0x228] ss:$16 sps:$4 sm:$0xff]   ;;  %v3404_v22 = vld [vmem:[#allocation5 + $0x24c] ss:$16 sps:$4 sm:$0xff]  }
  0x67   :  { %813 = vmatprep.subr.bf16.mxu1 %v3337_v33  ;;  %v3376_v23 = vld [vmem:[#allocation5 + $0x280] ss:$16 sps:$4 sm:$0xff]   ;;  %v3384_v24 = vld [vmem:[#allocation5 + $0x2a4] ss:$16 sps:$4 sm:$0xff]   ;;  %v3402_v25 = vld [vmem:[#allocation5 + $0x248] ss:$16 sps:$4 sm:$0xff]  }
  0x68   :  { %v3390_v28 = vld [vmem:[#allocation5 + $0x2c4] ss:$16 sps:$4 sm:$0xff]   ;;  %v3405_v29 = vld [vmem:[#allocation5 + $0x268] ss:$16 sps:$4 sm:$0xff]   ;;  %v3394_v33 = vld [vmem:[#allocation5 + $0x2e0] ss:$16 sps:$4 sm:$0xff]  }
  0x69   :  { %732 = vmatpush1.bf16.msra.mxu0 %v3300_v26  ;;  %v3407_v26 = vld [vmem:[#allocation5 + $0x26c] ss:$16 sps:$4 sm:$0xff]   ;;  %v3396_v32 = vld [vmem:[#allocation5 + $0x2e4] ss:$16 sps:$4 sm:$0xff]   ;;  %v3440_v62 = vld [vmem:[#allocation7 + $0x90] ss:$24 sps:$4 sm:$0xff]  }
  0x6a   :  { %733 = vmatprep.subr.bf16.mxu0 %v3304_v27  ;;  %814 = vmatpush1.bf16.msra.mxu1 %v3339_v38  ;;  %v3382_v27 = vld [vmem:[#allocation5 + $0x2a0] ss:$16 sps:$4 sm:$0xff]   ;;  %v3413_v36 = vld [vmem:[#allocation5 + $0x2ac] ss:$16 sps:$4 sm:$0xff]   ;;  %v2925_v38 = vcombine.high %v186_v34, %v186_v34  ;;  %s2817_s26 = sshll.u32 %s3886_s25, 4  ;;  %s2818_s26 = int_to_ptr.vmem [resolvable:$true] %s2817_s26 }
  0x6b   :  { %815 = vmatprep.subr.bf16.mxu1 %v3343_v40  ;;  %v3411_v40 = vld [vmem:[#allocation5 + $0x2a8] ss:$16 sps:$4 sm:$0xff]   ;;  %v3439_v1 = vld [vmem:[#allocation7 + $0x6c] ss:$24 sps:$4 sm:$0xff]   ;;  %s3846_s27 = scalar_lea.vmem %s2818_s26, 128  ;;  %p3851_p5 = scmp.lt.s32.totalorder %s2818_s26, %s2818_s26 }
  0x6c   :  { %v3431_v0 = vld [vmem:[#allocation7 + $0x38] ss:$24 sps:$4 sm:$0xff]   ;;  %p3847_p4 = scmp.ne.s32.totalorder %s2818_s26, %s3846_s27  ;;  %p3852_p6 = scmp.lt.s32.totalorder %s3846_s27, %s3846_s27 }
  0x6d   :  { %734 = vmatpush1.bf16.msra.mxu0 %v3306_v30  ;;  %v3410_v30 = vld [vmem:[#allocation5 + $0x28c] ss:$16 sps:$4 sm:$0xff]   ;;  %v3494_v34 = vld [vmem:[#allocation7 + $0x240] ss:$24 sps:$4 sm:$0xff]  }
  0x6e   :  { %735 = vmatprep.subr.bf16.mxu0 %v3310_v31  ;;  %816 = vmatpush1.bf16.msra.mxu1 %v3345_v43  ;;  %v3388_v31 = vld [vmem:[#allocation5 + $0x2c0] ss:$16 sps:$4 sm:$0xff]   ;;  %v706_v43 = vsel %vm704_vm1, %v2924_v39, 0  ;;  %p3853_p7 = por %p3852_p6, %p3851_p5 }
  0x6f   :  { %817 = vmatprep.subr.bf16.mxu1 %v3349_v44  ;;  %v3424_v44 = vld [vmem:[#allocation7 + $0x4] ss:$24 sps:$4 sm:$0xff]   ;;  %v3491_v39 = vld [vmem:[#allocation7 + $0x218] ss:$24 sps:$4 sm:$0xff]  }
  0x70   :  { %p3854_p8 = pnand %p3853_p7, %p3847_p4 }
  0x71   :  { %736 = vmatpush1.bf16.msra.mxu0 %v3312_v35  ;;  %v3408_v35 = vld [vmem:[#allocation5 + $0x288] ss:$16 sps:$4 sm:$0xff]  }
  0x72   :  { %737 = vmatprep.subr.bf16.mxu0 %v3316_v37  ;;  %818 = vmatpush1.bf16.msra.mxu1 %v3351_v47  ;;  %v80_v37 = vld [vmem:[#allocation2 + $0x10] sm:$0xff] }
  0x73   :  { %819 = vmatprep.subr.bf16.mxu1 %v3355_v48  ;;  %v187_v48 = vld [vmem:[#allocation5 + $0x308] sm:$0xff] }
  0x75   :  { %738 = vmatpush1.bf16.msra.mxu0 %v3318_v41  ;;  %v84_v41 = vmax.f32 %v80_v37, 0.0  ;;  %v3493_v37 = vld [vmem:[#allocation7 + $0x21c] ss:$24 sps:$4 sm:$0xff]  }
  0x76   :  { %739 = vmatprep.subr.bf16.mxu0 %v3322_v42  ;;  %820 = vmatpush1.bf16.msra.mxu1 %v3357_v51  ;;  %v3416_v42 = vld [vmem:[#allocation5 + $0x2cc] ss:$16 sps:$4 sm:$0xff]   ;;  %v3417_v51 = vld [vmem:[#allocation5 + $0x2e8] ss:$16 sps:$4 sm:$0xff]  }
  0x77   :  { %821 = vmatprep.subr.bf16.mxu1 %v3361_v52  ;;  %v88_v47 = vpack.c.bf16 %v84_v41, %v84_v41  ;;  %v2927_v52 = vcombine.high %v187_v48, %v187_v48  ;;  %v3497_v41 = vld [vmem:[#allocation7 + $0x248] ss:$24 sps:$4 sm:$0xff]  }
  0x79   :  { %740 = vmatpush1.bf16.msra.mxu0 %v3324_v45  ;;  %v3414_v45 = vld [vmem:[#allocation5 + $0x2c8] ss:$16 sps:$4 sm:$0xff]  }
  0x7a   :  { %741 = vmatprep.subr.bf16.mxu0 %v3328_v46  ;;  %822 = vmatpush1.bf16.msra.mxu1 %v3363_v56  ;;  %v3419_v46 = vld [vmem:[#allocation5 + $0x2ec] ss:$16 sps:$4 sm:$0xff]  }
  0x7b   :  { %823 = vmatprep.subr.bf16.mxu1 %v3367_v57  ;;  %v3427_v56 = vld [vmem:[#allocation7 + $0xc] ss:$24 sps:$4 sm:$0xff]   ;;  %v3434_v57 = vld [vmem:[#allocation7 + $0x60] ss:$24 sps:$4 sm:$0xff]  }
  0x7d   :  { %742 = vmatpush1.bf16.msra.mxu0 %v3330_v49  ;;  %v3422_v49 = vld [vmem:[#allocation7] ss:$24 sps:$4 sm:$0xff]  }
  0x7e   :  { %743 = vmatprep.subr.bf16.mxu0 %v3334_v50  ;;  %824 = vmatpush1.bf16.msra.mxu1 %v3369_v60  ;;  %v3430_v50 = vld [vmem:[#allocation7 + $0x34] ss:$24 sps:$4 sm:$0xff]   ;;  %v3425_v60 = vld [vmem:[#allocation7 + $0x8] ss:$24 sps:$4 sm:$0xff]  }
  0x7f   :  { %825 = vmatprep.subr.bf16.mxu1 %v3373_v63  ;;  %v3448_v63 = vld [vmem:[#allocation7 + $0xc4] ss:$24 sps:$4 sm:$0xff]  }
  0x81   :  { %744 = vmatpush1.bf16.msra.mxu0 %v3336_v53  ;;  %v2926_v53 = vcombine.low %v187_v48, %v187_v48  ;;  %v3514_v48 = vld [vmem:[#allocation7 + $0x2d4] ss:$24 sps:$4 sm:$0xff]  }
  0x82   :  { %745 = vmatprep.subr.bf16.mxu0 %v3340_v54  ;;  %826 = vmatpush1.bf16.msra.mxu1 %v3375_v3  ;;  %v3428_v54 = vld [vmem:[#allocation7 + $0x30] ss:$24 sps:$4 sm:$0xff]   ;;  %v3454_v3 = vld [vmem:[#allocation7 + $0xf4] ss:$24 sps:$4 sm:$0xff]  }
  0x83   :  { %827 = vmatprep.subr.bf16.mxu1 %v3379_v5  ;;  %v712_v58 = vsel %vm704_vm1, %v2926_v53, 0  ;;  %v3445_v5 = vld [vmem:[#allocation7 + $0x9c] ss:$24 sps:$4 sm:$0xff]   ;;  %v3523_v53 = vld [vmem:[#allocation7 + $0x30c] ss:$24 sps:$4 sm:$0xff]  }
  0x85   :  { %746 = vmatpush1.bf16.msra.mxu0 %v3342_v55  ;;  %v3436_v55 = vld [vmem:[#allocation7 + $0x64] ss:$24 sps:$4 sm:$0xff]  }
  0x86   :  { %747 = vmatprep.subr.bf16.mxu0 %v3346_v59  ;;  %828 = vmatpush1.bf16.msra.mxu1 %v3381_v9  ;;  %v3442_v59 = vld [vmem:[#allocation7 + $0x94] ss:$24 sps:$4 sm:$0xff]  }
  0x87   :  { %829 = vmatprep.subr.bf16.mxu1 %v3385_v10  ;;  %v3451_v9 = vld [vmem:[#allocation7 + $0xcc] ss:$24 sps:$4 sm:$0xff]   ;;  %v3458_v10 = vld [vmem:[#allocation7 + $0x120] ss:$24 sps:$4 sm:$0xff]  }
  0x89   :  { %748 = vmatpush1.bf16.msra.mxu0 %v3348_v61  ;;  %v3433_v61 = vld [vmem:[#allocation7 + $0x3c] ss:$24 sps:$4 sm:$0xff]  }
  0x8a   :  { %758 = vmatprep.subr.bf16.mxu0 %v3354_v2  ;;  %830 = vmatpush1.bf16.msra.mxu1 %v3387_v13  ;;  %v3446_v2 = vld [vmem:[#allocation7 + $0xc0] ss:$24 sps:$4 sm:$0xff]   ;;  %v3457_v13 = vld [vmem:[#allocation7 + $0xfc] ss:$24 sps:$4 sm:$0xff]  }
  0x8b   :  { %840 = vmatprep.subr.bf16.mxu1 %v3393_v14  ;;  %v3464_v14 = vld [vmem:[#allocation7 + $0x150] ss:$24 sps:$4 sm:$0xff]  }
  0x8c   :  { %750 = vmatmul.mubr.bf16.vlgmr.msra.gmra.mrb[0].mxu0 %v86_v4 }
  0x8d   :  { %759 = vmatpush1.bf16.msra.mxu0 %v3352_v6  ;;  %2929 = vmatprep.mubr.msk.bf16.mxu0 %vm700_vm0, %v89_v7  ;;  %v3452_v6 = vld [vmem:[#allocation7 + $0xf0] ss:$24 sps:$4 sm:$0xff]  }
  0x8e   :  { %760 = vmatprep.subr.bf16.mxu0 %v3360_v8  ;;  %832 = vmatmul.mubr.bf16.vlgmr.msra.gmra.mrb[0].mxu1 %v86_v4  ;;  %v3437_v4 = vld [vmem:[#allocation7 + $0x68] ss:$24 sps:$4 sm:$0xff]   ;;  %v3443_v8 = vld [vmem:[#allocation7 + $0x98] ss:$24 sps:$4 sm:$0xff]  }
  0x8f   :  { %841 = vmatpush1.bf16.msra.mxu1 %v3391_v17  ;;  %2931 = vmatprep.mubr.msk.bf16.mxu1 %vm700_vm0, %v89_v7  ;;  %v3460_v7 = vld [vmem:[#allocation7 + $0x124] ss:$24 sps:$4 sm:$0xff]  }
  0x90   :  { %842 = vmatprep.subr.bf16.mxu1 %v3399_v18  ;;  %v3463_v17 = vld [vmem:[#allocation7 + $0x12c] ss:$24 sps:$4 sm:$0xff]   ;;  %v3470_v18 = vld [vmem:[#allocation7 + $0x180] ss:$24 sps:$4 sm:$0xff]  }
  0x91   :  { %761 = vmatpush1.bf16.msra.mxu0 %v3358_v11  ;;  %v3466_v11 = vld [vmem:[#allocation7 + $0x154] ss:$24 sps:$4 sm:$0xff]  }
  0x92   :  { %762 = vmatprep.subr.bf16.mxu0 %v3366_v12  ;;  %v3449_v12 = vld [vmem:[#allocation7 + $0xc8] ss:$24 sps:$4 sm:$0xff]  }
  0x93   :  { %843 = vmatpush1.bf16.msra.mxu1 %v3397_v21  ;;  %v3469_v21 = vld [vmem:[#allocation7 + $0x15c] ss:$24 sps:$4 sm:$0xff]  }
  0x94   :  { %844 = vmatprep.subr.bf16.mxu1 %v3404_v22  ;;  %v3476_v22 = vld [vmem:[#allocation7 + $0x1b0] ss:$24 sps:$4 sm:$0xff]  }
  0x95   :  { %763 = vmatpush1.bf16.msra.mxu0 %v3364_v15  ;;  %v3472_v15 = vld [vmem:[#allocation7 + $0x184] ss:$24 sps:$4 sm:$0xff]  }
  0x96   :  { %764 = vmatprep.subr.bf16.mxu0 %v3372_v16  ;;  %v3455_v16 = vld [vmem:[#allocation7 + $0xf8] ss:$24 sps:$4 sm:$0xff]  }
  0x97   :  { %845 = vmatpush1.bf16.msra.mxu1 %v3402_v25  ;;  %v3475_v25 = vld [vmem:[#allocation7 + $0x18c] ss:$24 sps:$4 sm:$0xff]  }
  0x98   :  { %846 = vmatprep.subr.bf16.mxu1 %v3407_v26  ;;  %v3482_v26 = vld [vmem:[#allocation7 + $0x1e0] ss:$24 sps:$4 sm:$0xff]  }
  0x99   :  { %765 = vmatpush1.bf16.msra.mxu0 %v3370_v19  ;;  %v3478_v19 = vld [vmem:[#allocation7 + $0x1b4] ss:$24 sps:$4 sm:$0xff]  }
  0x9a   :  { %766 = vmatprep.subr.bf16.mxu0 %v3378_v20  ;;  %v3461_v20 = vld [vmem:[#allocation7 + $0x128] ss:$24 sps:$4 sm:$0xff]  }
  0x9b   :  { %847 = vmatpush1.bf16.msra.mxu1 %v3405_v29  ;;  %v3481_v29 = vld [vmem:[#allocation7 + $0x1bc] ss:$24 sps:$4 sm:$0xff]  }
  0x9c   :  { %848 = vmatprep.subr.bf16.mxu1 %v3410_v30  ;;  %v3488_v30 = vld [vmem:[#allocation7 + $0x210] ss:$24 sps:$4 sm:$0xff]  }
  0x9d   :  { %767 = vmatpush1.bf16.msra.mxu0 %v3376_v23  ;;  %v3484_v23 = vld [vmem:[#allocation7 + $0x1e4] ss:$24 sps:$4 sm:$0xff]  }
  0x9e   :  { %768 = vmatprep.subr.bf16.mxu0 %v3384_v24  ;;  %v3467_v24 = vld [vmem:[#allocation7 + $0x158] ss:$24 sps:$4 sm:$0xff]  }
  0x9f   :  { %849 = vmatpush1.bf16.msra.mxu1 %v3408_v35  ;;  %v3502_v35 = vld [vmem:[#allocation7 + $0x274] ss:$24 sps:$4 sm:$0xff]  }
  0xa0   :  { %850 = vmatprep.subr.bf16.mxu1 %v3413_v36  ;;  %v3485_v36 = vld [vmem:[#allocation7 + $0x1e8] ss:$24 sps:$4 sm:$0xff]  }
  0xa1   :  { %769 = vmatpush1.bf16.msra.mxu0 %v3382_v27  ;;  %v3490_v27 = vld [vmem:[#allocation7 + $0x214] ss:$24 sps:$4 sm:$0xff]  }
  0xa2   :  { %770 = vmatprep.subr.bf16.mxu0 %v3390_v28  ;;  %v3473_v28 = vld [vmem:[#allocation7 + $0x188] ss:$24 sps:$4 sm:$0xff]  }
  0xa3   :  { %851 = vmatpush1.bf16.msra.mxu1 %v3411_v40  ;;  %v3499_v40 = vld [vmem:[#allocation7 + $0x24c] ss:$24 sps:$4 sm:$0xff]  }
  0xa4   :  { %852 = vmatprep.subr.bf16.mxu1 %v3416_v42  ;;  %v3505_v42 = vld [vmem:[#allocation7 + $0x27c] ss:$24 sps:$4 sm:$0xff]  }
  0xa5   :  { %771 = vmatpush1.bf16.msra.mxu0 %v3388_v31  ;;  %v3496_v31 = vld [vmem:[#allocation7 + $0x244] ss:$24 sps:$4 sm:$0xff]  }
  0xa6   :  { %772 = vmatprep.subr.bf16.mxu0 %v3396_v32  ;;  %v3479_v32 = vld [vmem:[#allocation7 + $0x1b8] ss:$24 sps:$4 sm:$0xff]  }
  0xa7   :  { %853 = vmatpush1.bf16.msra.mxu1 %v3414_v45  ;;  %v3511_v45 = vld [vmem:[#allocation7 + $0x2ac] ss:$24 sps:$4 sm:$0xff]  }
  0xa8   :  { %854 = vmatprep.subr.bf16.mxu1 %v3419_v46  ;;  %v3506_v46 = vld [vmem:[#allocation7 + $0x2a0] ss:$24 sps:$4 sm:$0xff]  }
  0xa9   :  { %773 = vmatpush1.bf16.msra.mxu0 %v3394_v33  ;;  %v3487_v33 = vld [vmem:[#allocation7 + $0x1ec] ss:$24 sps:$4 sm:$0xff]  }
  0xaa   :  { %2928 = vmatprep.subr.msk.bf16.mxu0 %vm704_vm1, %v2925_v38  ;;  %v3500_v38 = vld [vmem:[#allocation7 + $0x270] ss:$24 sps:$4 sm:$0xff]  }
  0xab   :  { %855 = vmatpush1.bf16.msra.mxu1 %v3417_v51  ;;  %v3515_v51 = vld [vmem:[#allocation7 + $0x2d8] ss:$24 sps:$4 sm:$0xff]  }
  0xac   :  { %2930 = vmatprep.subr.msk.bf16.mxu1 %vm704_vm1, %v2927_v52  ;;  %v3520_v52 = vld [vmem:[#allocation7 + $0x304] ss:$24 sps:$4 sm:$0xff]  }
  0xad   :  { %775 = vmatpush1.bf16.msra.mxu0 %v706_v43  ;;  %v3503_v43 = vld [vmem:[#allocation7 + $0x278] ss:$24 sps:$4 sm:$0xff]  }
  0xae   :  { %2041 = vmatprep.subr.bf16.mxu0 %v3424_v44  ;;  %v3508_v44 = vld [vmem:[#allocation7 + $0x2a4] ss:$24 sps:$4 sm:$0xff]  }
  0xaf   :  { %857 = vmatpush1.bf16.msra.mxu1 %v712_v58 }
  0xb0   :  { %791 = vmatmul.mubr.bf16.vlgmr.msra.gmra.mrb[0].mxu0 %v88_v47  ;;  %2123 = vmatprep.subr.bf16.mxu1 %v3427_v56 }
  0xb1   :  { %2042 = vmatpush1.bf16.msra.mxu0 %v3422_v49  ;;  %v3517_v49 = vld [vmem:[#allocation7 + $0x2dc] ss:$24 sps:$4 sm:$0xff]  }
  0xb2   :  { %2043 = vmatprep.subr.bf16.mxu0 %v3430_v50  ;;  %873 = vmatmul.mubr.bf16.vlgmr.msra.gmra.mrb[0].mxu1 %v88_v47  ;;  %v3509_v47 = vld [vmem:[#allocation7 + $0x2a8] ss:$24 sps:$4 sm:$0xff]  }
  0xb3   :  { %2124 = vmatpush1.bf16.msra.mxu1 %v3425_v60  ;;  %v3512_v50 = vld [vmem:[#allocation7 + $0x2d0] ss:$24 sps:$4 sm:$0xff]  }
  0xb4   :  { %2125 = vmatprep.subr.bf16.mxu1 %v3433_v61 }
  0xb5   :  { %2044 = vmatpush1.bf16.msra.mxu0 %v3428_v54  ;;  %v190_v54 = vlaneseq }
  0xb6   :  { %2045 = vmatprep.subr.bf16.mxu0 %v3436_v55 }
  0xb7   :  { %2126 = vmatpush1.bf16.msra.mxu1 %v3431_v0  ;;  %v3976_v55 = vshrl.u32 %v190_v54, 7  ;;  %v3580_v54 = vld [vmem:[#allocation7 + $0x4e4] ss:$24 sps:$4 sm:$0xff]  }
  0xb8   :  { %2127 = vmatprep.subr.bf16.mxu1 %v3439_v1 }
  0xb9   :  { %2046 = vmatpush1.bf16.msra.mxu0 %v3434_v57  ;;  %v192_v56 = vsub.s32 0, %v3976_v55  ;;  %v3982_v57 = vld [vmem:[%s4031_s2] sm:$0xf]  ;;  %v196_v58 = vsub.s32 1, %v3976_v55 }
  0xba   :  { %2047 = vmatprep.subr.bf16.mxu0 %v3442_v59 }
  0xbb   :  { %2128 = vmatpush1.bf16.msra.mxu1 %v3437_v4  ;;  %v193_v59 = vrot.slane %v3982_v57, %v192_v56  ;;  %v197_v60 = vrot.slane %v3982_v57, %v196_v58  ;;  %v3583_v56 = vld [vmem:[#allocation7 + $0x4ec] ss:$24 sps:$4 sm:$0xff]   ;;  %v3578_v58 = vld [vmem:[#allocation7 + $0x4e0] ss:$24 sps:$4 sm:$0xff]  }
  0xbc   :  { %2129 = vmatprep.subr.bf16.mxu1 %v3445_v5  ;;  %v204_v5 = vsub.s32 3, %v3976_v55 }
  0xbd   :  { %2048 = vmatpush1.bf16.msra.mxu0 %v3440_v62 }
  0xbe   :  { %2049 = vmatprep.subr.bf16.mxu0 %v3448_v63 }
  0xbf   :  { %2130 = vmatpush1.bf16.msra.mxu1 %v3443_v8  ;;  %v3521_v8 = vld [vmem:[#allocation7 + $0x308] ss:$24 sps:$4 sm:$0xff]  }
  0xc0   :  { %2131 = vmatprep.subr.bf16.mxu1 %v3451_v9 }
  0xc1   :  { %2050 = vmatpush1.bf16.msra.mxu0 %v3446_v2 }
  0xc2   :  { %2051 = vmatprep.subr.bf16.mxu0 %v3454_v3 }
  0xc3   :  { %2132 = vmatpush1.bf16.msra.mxu1 %v3449_v12  ;;  %v205_v12 = vrot.slane %v3982_v57, %v204_v5  ;;  %v3598_v5 = vld [vmem:[#allocation7 + $0x574] ss:$24 sps:$4 sm:$0xff]  }
  0xc4   :  { %2133 = vmatprep.subr.bf16.mxu1 %v3457_v13  ;;  %v3524_v13 = vld [vmem:[#allocation7 + $0x330] ss:$24 sps:$4 sm:$0xff]  }
  0xc5   :  { %2052 = vmatpush1.bf16.msra.mxu0 %v3452_v6 }
  0xc6   :  { %2053 = vmatprep.subr.bf16.mxu0 %v3460_v7  ;;  %v3518_v7 = vld [vmem:[#allocation7 + $0x300] ss:$24 sps:$4 sm:$0xff]  }
  0xc7   :  { %2134 = vmatpush1.bf16.msra.mxu1 %v3455_v16  ;;  %v3532_v16 = vld [vmem:[#allocation7 + $0x364] ss:$24 sps:$4 sm:$0xff]  }
  0xc8   :  { %2135 = vmatprep.subr.bf16.mxu1 %v3463_v17  ;;  %v3535_v17 = vld [vmem:[#allocation7 + $0x36c] ss:$24 sps:$4 sm:$0xff]  }
  0xc9   :  { %2054 = vmatpush1.bf16.msra.mxu0 %v3458_v10  ;;  %v3526_v10 = vld [vmem:[#allocation7 + $0x334] ss:$24 sps:$4 sm:$0xff]  }
  0xca   :  { %2055 = vmatprep.subr.bf16.mxu0 %v3466_v11  ;;  %v3529_v11 = vld [vmem:[#allocation7 + $0x33c] ss:$24 sps:$4 sm:$0xff]  }
  0xcb   :  { %2136 = vmatpush1.bf16.msra.mxu1 %v3461_v20 }
  0xcc   :  { %2137 = vmatprep.subr.bf16.mxu1 %v3469_v21 }
  0xcd   :  { %2056 = vmatpush1.bf16.msra.mxu0 %v3464_v14  ;;  %v3527_v14 = vld [vmem:[#allocation7 + $0x338] ss:$24 sps:$4 sm:$0xff]  }
  0xce   :  { %2057 = vmatprep.subr.bf16.mxu0 %v3472_v15 }
  0xcf   :  { %2138 = vmatpush1.bf16.msra.mxu1 %v3467_v24 }
  0xd0   :  { %2139 = vmatprep.subr.bf16.mxu1 %v3475_v25  ;;  %v3538_v25 = vld [vmem:[#allocation7 + $0x394] ss:$24 sps:$4 sm:$0xff]  }
  0xd1   :  { %2058 = vmatpush1.bf16.msra.mxu0 %v3470_v18 }
  0xd2   :  { %2059 = vmatprep.subr.bf16.mxu0 %v3478_v19 }
  0xd3   :  { %2140 = vmatpush1.bf16.msra.mxu1 %v3473_v28  ;;  %v3536_v28 = vld [vmem:[#allocation7 + $0x390] ss:$24 sps:$4 sm:$0xff]  }
  0xd4   :  { %2141 = vmatprep.subr.bf16.mxu1 %v3481_v29  ;;  %v3539_v29 = vld [vmem:[#allocation7 + $0x398] ss:$24 sps:$4 sm:$0xff]  }
  0xd5   :  { %2060 = vmatpush1.bf16.msra.mxu0 %v3476_v22  ;;  %v3530_v22 = vld [vmem:[#allocation7 + $0x360] ss:$24 sps:$4 sm:$0xff]  }
  0xd6   :  { %2061 = vmatprep.subr.bf16.mxu0 %v3484_v23  ;;  %v3533_v23 = vld [vmem:[#allocation7 + $0x368] ss:$24 sps:$4 sm:$0xff]  }
  0xd7   :  { %2142 = vmatpush1.bf16.msra.mxu1 %v3479_v32  ;;  %v3542_v32 = vld [vmem:[#allocation7 + $0x3c0] ss:$24 sps:$4 sm:$0xff]  }
  0xd8   :  { %2143 = vmatprep.subr.bf16.mxu1 %v3487_v33  ;;  %v3545_v33 = vld [vmem:[#allocation7 + $0x3c8] ss:$24 sps:$4 sm:$0xff]  }
  0xd9   :  { %2062 = vmatpush1.bf16.msra.mxu0 %v3482_v26  ;;  %v3541_v26 = vld [vmem:[#allocation7 + $0x39c] ss:$24 sps:$4 sm:$0xff]  }
  0xda   :  { %2063 = vmatprep.subr.bf16.mxu0 %v3490_v27 }
  0xdb   :  { %2144 = vmatpush1.bf16.msra.mxu1 %v3485_v36  ;;  %v3548_v36 = vld [vmem:[#allocation7 + $0x3f0] ss:$24 sps:$4 sm:$0xff]  }
  0xdc   :  { %2145 = vmatprep.subr.bf16.mxu1 %v3493_v37  ;;  %v3551_v37 = vld [vmem:[#allocation7 + $0x3f8] ss:$24 sps:$4 sm:$0xff]  }
  0xdd   :  { %2064 = vmatpush1.bf16.msra.mxu0 %v3488_v30  ;;  %v3544_v30 = vld [vmem:[#allocation7 + $0x3c4] ss:$24 sps:$4 sm:$0xff]  }
  0xde   :  { %2065 = vmatprep.subr.bf16.mxu0 %v3496_v31  ;;  %v3547_v31 = vld [vmem:[#allocation7 + $0x3cc] ss:$24 sps:$4 sm:$0xff]  }
  0xdf   :  { %2146 = vmatpush1.bf16.msra.mxu1 %v3491_v39  ;;  %v3559_v39 = vld [vmem:[#allocation7 + $0x42c] ss:$24 sps:$4 sm:$0xff]  }
  0xe0   :  { %2147 = vmatprep.subr.bf16.mxu1 %v3499_v40  ;;  %v3554_v40 = vld [vmem:[#allocation7 + $0x420] ss:$24 sps:$4 sm:$0xff]  }
  0xe1   :  { %2066 = vmatpush1.bf16.msra.mxu0 %v3494_v34  ;;  %v3550_v34 = vld [vmem:[#allocation7 + $0x3f4] ss:$24 sps:$4 sm:$0xff]  }
  0xe2   :  { %2067 = vmatprep.subr.bf16.mxu0 %v3502_v35  ;;  %v3553_v35 = vld [vmem:[#allocation7 + $0x3fc] ss:$24 sps:$4 sm:$0xff]  }
  0xe3   :  { %2148 = vmatpush1.bf16.msra.mxu1 %v3497_v41  ;;  %v3557_v41 = vld [vmem:[#allocation7 + $0x428] ss:$24 sps:$4 sm:$0xff]  }
  0xe4   :  { %2149 = vmatprep.subr.bf16.mxu1 %v3505_v42  ;;  %v3562_v42 = vld [vmem:[#allocation7 + $0x454] ss:$24 sps:$4 sm:$0xff]  }
  0xe5   :  { %2068 = vmatpush1.bf16.msra.mxu0 %v3500_v38  ;;  %v3556_v38 = vld [vmem:[#allocation7 + $0x424] ss:$24 sps:$4 sm:$0xff]  }
  0xe6   :  { %2069 = vmatprep.subr.bf16.mxu0 %v3508_v44  ;;  %v3560_v44 = vld [vmem:[#allocation7 + $0x450] ss:$24 sps:$4 sm:$0xff]  }
  0xe7   :  { %2150 = vmatpush1.bf16.msra.mxu1 %v3503_v43  ;;  %v3565_v43 = vld [vmem:[#allocation7 + $0x45c] ss:$24 sps:$4 sm:$0xff]  }
  0xe8   :  { %2151 = vmatprep.subr.bf16.mxu1 %v3511_v45  ;;  %v3563_v45 = vld [vmem:[#allocation7 + $0x458] ss:$24 sps:$4 sm:$0xff]  }
  0xe9   :  { %2070 = vmatpush1.bf16.msra.mxu0 %v3506_v46  ;;  %v3568_v46 = vld [vmem:[#allocation7 + $0x484] ss:$24 sps:$4 sm:$0xff]  }
  0xea   :  { %2071 = vmatprep.subr.bf16.mxu0 %v3514_v48  ;;  %v3566_v48 = vld [vmem:[#allocation7 + $0x480] ss:$24 sps:$4 sm:$0xff]  }
  0xeb   :  { %2152 = vmatpush1.bf16.msra.mxu1 %v3509_v47  ;;  %v3571_v47 = vld [vmem:[#allocation7 + $0x48c] ss:$24 sps:$4 sm:$0xff]  }
  0xec   :  { %2153 = vmatprep.subr.bf16.mxu1 %v3517_v49  ;;  %v3569_v49 = vld [vmem:[#allocation7 + $0x488] ss:$24 sps:$4 sm:$0xff]  }
  0xed   :  { %2072 = vmatpush1.bf16.msra.mxu0 %v3512_v50  ;;  %v3574_v50 = vld [vmem:[#allocation7 + $0x4b4] ss:$24 sps:$4 sm:$0xff]  }
  0xee   :  { %2082 = vmatprep.subr.bf16.mxu0 %v3520_v52  ;;  %v3572_v52 = vld [vmem:[#allocation7 + $0x4b0] ss:$24 sps:$4 sm:$0xff]  }
  0xef   :  { %2154 = vmatpush1.bf16.msra.mxu1 %v3515_v51  ;;  %v3577_v51 = vld [vmem:[#allocation7 + $0x4bc] ss:$24 sps:$4 sm:$0xff]  }
  0xf0   :  { %2164 = vmatprep.subr.bf16.mxu1 %v3523_v53  ;;  %v3575_v53 = vld [vmem:[#allocation7 + $0x4b8] ss:$24 sps:$4 sm:$0xff]  }
 0x183   :  { %v792_v61 = vpop.f32.mrb[0].mxu0 }
 0x184   :  { %v3239_v62 = vadd.f32 %v792_v61, %v193_v59  ;;  %v794_v63 = vpop.f32.mrb[1].mxu0  ;;  %v3581_v59 = vld [vmem:[#allocation7 + $0x4e8] ss:$24 sps:$4 sm:$0xff]   ;;  %v3589_v61 = vld [vmem:[#allocation7 + $0x51c] ss:$24 sps:$4 sm:$0xff]  }
 0x185   :  { %v3240_v0 = vadd.f32 %v794_v63, %v197_v60  ;;  %v796_v1 = vpop.f32.mrb[2].mxu0  ;;  %v3997_v15 = vpop.f32.mrb[0].mxu1  ;;  %v3586_v60 = vld [vmem:[#allocation7 + $0x514] ss:$24 sps:$4 sm:$0xff]   ;;  %v3587_v63 = vld [vmem:[#allocation7 + $0x518] ss:$24 sps:$4 sm:$0xff]  }
 0x186   :  { %v881_v2 = vmax.f32 %v3239_v62, 0.0  ;;  %v797_v3 = vpop.f32.mrb[3].mxu0  ;;  %v876_v18 = vpop.f32.mrb[1].mxu1  ;;  %v3584_v62 = vld [vmem:[#allocation7 + $0x510] ss:$24 sps:$4 sm:$0xff]  }
 0x187   :  { %v882_v4 = vmax.f32 %v3240_v0, 0.0  ;;  %v3242_v19 = vadd.f32 %v876_v18, %v205_v12  ;;  %v878_v20 = vpop.f32.mrb[2].mxu1  ;;  %v3592_v0 = vld [vmem:[#allocation7 + $0x544] ss:$24 sps:$4 sm:$0xff]   ;;  %v3593_v3 = vld [vmem:[#allocation7 + $0x548] ss:$24 sps:$4 sm:$0xff]  }
 0x188   :  { %v3990_v9 = vpack.c.bf16 %v881_v2, %v881_v2  ;;  %v879_v21 = vpop.f32.mrb[3].mxu1  ;;  %v3595_v1 = vld [vmem:[#allocation7 + $0x54c] ss:$24 sps:$4 sm:$0xff]   ;;  %v3590_v2 = vld [vmem:[#allocation7 + $0x540] ss:$24 sps:$4 sm:$0xff]  }
 0x189   :  { %v3988_v6 = vpack.c.bf16 %v882_v4, %v882_v4  ;;  %v884_v24 = vmax.f32 %v3242_v19, 0.0  ;;  %v200_v4 = vsub.s32 2, %v3976_v55  ;;  %v3604_v12 = vld [vmem:[#allocation7 + $0x5a4] ss:$24 sps:$4 sm:$0xff]   ;;  %v3608_v19 = vld [vmem:[#allocation7 + $0x5d0] ss:$24 sps:$4 sm:$0xff]  }
 0x18a   :  { %v3613_v18 = vld [vmem:[#allocation7 + $0x5dc] ss:$24 sps:$4 sm:$0xff]   ;;  %v3611_v20 = vld [vmem:[#allocation7 + $0x5d8] ss:$24 sps:$4 sm:$0xff]  }
 0x18b   :  { %2073 = vmatprep.mubr.bf16.mxu0 %v3988_v6  ;;  %2155 = vmatprep.mubr.bf16.mxu1 %v3988_v6  ;;  %v3999_v27 = vpack.c.bf16 %v884_v24, %v884_v24  ;;  %v3619_v24 = vld [vmem:[#allocation7 + $0x44] ss:$24 sps:$4 sm:$0xff]  }
 0x18c   :  { %2074 = vmatmul.mubr.bf16.vlgmr.msra.gmra.mrb[4].mxu0 %v3990_v9  ;;  %2156 = vmatmul.mubr.bf16.vlgmr.msra.gmra.mrb[4].mxu1 %v3990_v9 }
 0x18d   :  { %2083 = vmatpush1.bf16.msra.mxu0 %v3518_v7  ;;  %2165 = vmatpush1.bf16.msra.mxu1 %v3521_v8  ;;  %v3601_v7 = vld [vmem:[#allocation7 + $0x57c] ss:$24 sps:$4 sm:$0xff]   ;;  %v3596_v8 = vld [vmem:[#allocation7 + $0x570] ss:$24 sps:$4 sm:$0xff]  }
 0x18e   :  { %2084 = vmatprep.subr.bf16.mxu0 %v3526_v10  ;;  %2166 = vmatprep.subr.bf16.mxu1 %v3529_v11  ;;  %v3599_v10 = vld [vmem:[#allocation7 + $0x578] ss:$24 sps:$4 sm:$0xff]   ;;  %v201_v11 = vrot.slane %v3982_v57, %v200_v4  ;;  %v3616_v57 = vld [vmem:[#allocation7 + $0x14] ss:$24 sps:$4 sm:$0xff]  }
 0x18f   :  { %2114 = vmatprep.mubr.bf16.mxu0 %v3999_v27  ;;  %2196 = vmatprep.mubr.bf16.mxu1 %v3999_v27  ;;  %v3659_v4 = vld [vmem:[#allocation7 + $0x2e0] ss:$24 sps:$4 sm:$0xff]  }
 0x190   :  { %v3241_v55 = vadd.f32 %v3997_v15, %v201_v11  ;;  %v3710_v15 = vld [vmem:[#allocation8 + $0x40] sm:$0xff]   ;;  %v3670_v11 = vld [vmem:[#allocation7 + $0x374] ss:$24 sps:$4 sm:$0xff]  }
 0x191   :  { %2085 = vmatpush1.bf16.msra.mxu0 %v3524_v13  ;;  %2167 = vmatpush1.bf16.msra.mxu1 %v3527_v14  ;;  %v3607_v13 = vld [vmem:[#allocation7 + $0x5ac] ss:$24 sps:$4 sm:$0xff]   ;;  %v3602_v14 = vld [vmem:[#allocation7 + $0x5a0] ss:$24 sps:$4 sm:$0xff]  }
 0x192   :  { %2086 = vmatprep.subr.bf16.mxu0 %v3532_v16  ;;  %2168 = vmatprep.subr.bf16.mxu1 %v3535_v17  ;;  %v3605_v16 = vld [vmem:[#allocation7 + $0x5a8] ss:$24 sps:$4 sm:$0xff]   ;;  %v3610_v17 = vld [vmem:[#allocation7 + $0x5d4] ss:$24 sps:$4 sm:$0xff]   ;;  %v883_v21 = vmax.f32 %v3241_v55, 0.0 }
 0x193   :  { %v3674_v55 = vld [vmem:[#allocation7 + $0x3d0] ss:$24 sps:$4 sm:$0xff]  }
 0x195   :  { %2087 = vmatpush1.bf16.msra.mxu0 %v3530_v22  ;;  %2169 = vmatpush1.bf16.msra.mxu1 %v3533_v23  ;;  %v3614_v22 = vld [vmem:[#allocation7 + $0x10] ss:$24 sps:$4 sm:$0xff]   ;;  %v4006_v23 = vpack.c.bf16 %v883_v21, %v883_v21  ;;  %v3685_v21 = vld [vmem:[#allocation7 + $0x464] ss:$24 sps:$4 sm:$0xff]  }
 0x196   :  { %2088 = vmatprep.subr.bf16.mxu0 %v3538_v25  ;;  %2170 = vmatprep.subr.bf16.mxu1 %v3541_v26  ;;  %v3711_v25 = vld [vmem:[#allocation8] sm:$0xff]   ;;  %v3712_v26 = vld [vmem:[#allocation8 + $0x48] sm:$0xff]  }
 0x199   :  { %2089 = vmatpush1.bf16.msra.mxu0 %v3536_v28  ;;  %2171 = vmatpush1.bf16.msra.mxu1 %v3539_v29  ;;  %v3617_v28 = vld [vmem:[#allocation7 + $0x40] ss:$24 sps:$4 sm:$0xff]   ;;  %v3622_v29 = vld [vmem:[#allocation7 + $0x74] ss:$24 sps:$4 sm:$0xff]  }
 0x19a   :  { %2090 = vmatprep.subr.bf16.mxu0 %v3544_v30  ;;  %2172 = vmatprep.subr.bf16.mxu1 %v3547_v31  ;;  %v3713_v30 = vld [vmem:[#allocation8 + $0x8] sm:$0xff]   ;;  %v3714_v31 = vld [vmem:[#allocation8 + $0x50] sm:$0xff]  }
 0x19d   :  { %2091 = vmatpush1.bf16.msra.mxu0 %v3542_v32  ;;  %2173 = vmatpush1.bf16.msra.mxu1 %v3545_v33  ;;  %v3620_v32 = vld [vmem:[#allocation7 + $0x70] ss:$24 sps:$4 sm:$0xff]   ;;  %v3625_v33 = vld [vmem:[#allocation7 + $0xa4] ss:$24 sps:$4 sm:$0xff]  }
 0x19e   :  { %2092 = vmatprep.subr.bf16.mxu0 %v3550_v34  ;;  %2174 = vmatprep.subr.bf16.mxu1 %v3553_v35  ;;  %v3715_v34 = vld [vmem:[#allocation8 + $0x10] sm:$0xff]   ;;  %v3716_v35 = vld [vmem:[#allocation8 + $0x58] sm:$0xff]  }
 0x1a1   :  { %2093 = vmatpush1.bf16.msra.mxu0 %v3548_v36  ;;  %2175 = vmatpush1.bf16.msra.mxu1 %v3551_v37  ;;  %v3623_v36 = vld [vmem:[#allocation7 + $0xa0] ss:$24 sps:$4 sm:$0xff]  }
 0x1a2   :  { %2094 = vmatprep.subr.bf16.mxu0 %v3556_v38  ;;  %2176 = vmatprep.subr.bf16.mxu1 %v3559_v39  ;;  %v3717_v37 = vld [vmem:[#allocation8 + $0x18] sm:$0xff]   ;;  %v3718_v38 = vld [vmem:[#allocation8 + $0x60] sm:$0xff]   ;;  %v3626_v39 = vld [vmem:[#allocation7 + $0xd0] ss:$24 sps:$4 sm:$0xff]  }
 0x1a5   :  { %2095 = vmatpush1.bf16.msra.mxu0 %v3554_v40  ;;  %2177 = vmatpush1.bf16.msra.mxu1 %v3557_v41  ;;  %v3631_v40 = vld [vmem:[#allocation7 + $0x104] ss:$24 sps:$4 sm:$0xff]  }
 0x1a6   :  { %2096 = vmatprep.subr.bf16.mxu0 %v3562_v42  ;;  %2178 = vmatprep.subr.bf16.mxu1 %v3565_v43  ;;  %v3719_v41 = vld [vmem:[#allocation8 + $0x20] sm:$0xff]   ;;  %v3720_v42 = vld [vmem:[#allocation8 + $0x68] sm:$0xff]  }
 0x1a7   :  { %v3629_v43 = vld [vmem:[#allocation7 + $0x100] ss:$24 sps:$4 sm:$0xff]  }
 0x1a9   :  { %2097 = vmatpush1.bf16.msra.mxu0 %v3560_v44  ;;  %2179 = vmatpush1.bf16.msra.mxu1 %v3563_v45  ;;  %v3634_v44 = vld [vmem:[#allocation7 + $0x134] ss:$24 sps:$4 sm:$0xff]  }
 0x1aa   :  { %2098 = vmatprep.subr.bf16.mxu0 %v3568_v46  ;;  %2180 = vmatprep.subr.bf16.mxu1 %v3571_v47  ;;  %v3721_v45 = vld [vmem:[#allocation8 + $0x28] sm:$0xff]   ;;  %v3722_v46 = vld [vmem:[#allocation8 + $0x70] sm:$0xff]  }
 0x1ab   :  { %v3632_v47 = vld [vmem:[#allocation7 + $0x130] ss:$24 sps:$4 sm:$0xff]  }
 0x1ad   :  { %2099 = vmatpush1.bf16.msra.mxu0 %v3566_v48  ;;  %2181 = vmatpush1.bf16.msra.mxu1 %v3569_v49  ;;  %v3637_v48 = vld [vmem:[#allocation7 + $0x164] ss:$24 sps:$4 sm:$0xff]   ;;  %v3723_v49 = vld [vmem:[#allocation8 + $0x30] sm:$0xff]  }
 0x1ae   :  { %2100 = vmatprep.subr.bf16.mxu0 %v3574_v50  ;;  %2182 = vmatprep.subr.bf16.mxu1 %v3577_v51  ;;  %v3635_v50 = vld [vmem:[#allocation7 + $0x160] ss:$24 sps:$4 sm:$0xff]   ;;  %v3640_v51 = vld [vmem:[#allocation7 + $0x194] ss:$24 sps:$4 sm:$0xff]  }
 0x1b1   :  { %2101 = vmatpush1.bf16.msra.mxu0 %v3572_v52  ;;  %2183 = vmatpush1.bf16.msra.mxu1 %v3575_v53  ;;  %v3638_v52 = vld [vmem:[#allocation7 + $0x190] ss:$24 sps:$4 sm:$0xff]   ;;  %v3643_v53 = vld [vmem:[#allocation7 + $0x1c4] ss:$24 sps:$4 sm:$0xff]  }
 0x1b2   :  { %2102 = vmatprep.subr.bf16.mxu0 %v3580_v54  ;;  %2184 = vmatprep.subr.bf16.mxu1 %v3583_v56  ;;  %v3641_v54 = vld [vmem:[#allocation7 + $0x1c0] ss:$24 sps:$4 sm:$0xff]   ;;  %v3646_v56 = vld [vmem:[#allocation7 + $0x1f4] ss:$24 sps:$4 sm:$0xff]  }
 0x1b5   :  { %2103 = vmatpush1.bf16.msra.mxu0 %v3578_v58  ;;  %2185 = vmatpush1.bf16.msra.mxu1 %v3581_v59  ;;  %v3644_v58 = vld [vmem:[#allocation7 + $0x1f0] ss:$24 sps:$4 sm:$0xff]   ;;  %v3649_v59 = vld [vmem:[#allocation7 + $0x224] ss:$24 sps:$4 sm:$0xff]  }
 0x1b6   :  { %2104 = vmatprep.subr.bf16.mxu0 %v3586_v60  ;;  %2186 = vmatprep.subr.bf16.mxu1 %v3589_v61  ;;  %v3647_v60 = vld [vmem:[#allocation7 + $0x220] ss:$24 sps:$4 sm:$0xff]   ;;  %v3652_v61 = vld [vmem:[#allocation7 + $0x254] ss:$24 sps:$4 sm:$0xff]  }
 0x1b9   :  { %2105 = vmatpush1.bf16.msra.mxu0 %v3584_v62  ;;  %2187 = vmatpush1.bf16.msra.mxu1 %v3587_v63  ;;  %v3650_v62 = vld [vmem:[#allocation7 + $0x250] ss:$24 sps:$4 sm:$0xff]   ;;  %v3655_v63 = vld [vmem:[#allocation7 + $0x284] ss:$24 sps:$4 sm:$0xff]  }
 0x1ba   :  { %2106 = vmatprep.subr.bf16.mxu0 %v3592_v0  ;;  %2188 = vmatprep.subr.bf16.mxu1 %v3595_v1  ;;  %v3653_v0 = vld [vmem:[#allocation7 + $0x280] ss:$24 sps:$4 sm:$0xff]   ;;  %v3658_v1 = vld [vmem:[#allocation7 + $0x2b4] ss:$24 sps:$4 sm:$0xff]  }
 0x1bd   :  { %2107 = vmatpush1.bf16.msra.mxu0 %v3590_v2  ;;  %2189 = vmatpush1.bf16.msra.mxu1 %v3593_v3  ;;  %v3656_v2 = vld [vmem:[#allocation7 + $0x2b0] ss:$24 sps:$4 sm:$0xff]   ;;  %v3661_v3 = vld [vmem:[#allocation7 + $0x2e4] ss:$24 sps:$4 sm:$0xff]  }
 0x1be   :  { %2108 = vmatprep.subr.bf16.mxu0 %v3598_v5  ;;  %2190 = vmatprep.subr.bf16.mxu1 %v3601_v7  ;;  %v3664_v5 = vld [vmem:[#allocation7 + $0x314] ss:$24 sps:$4 sm:$0xff]   ;;  %v3662_v7 = vld [vmem:[#allocation7 + $0x310] ss:$24 sps:$4 sm:$0xff]  }
 0x1c1   :  { %2109 = vmatpush1.bf16.msra.mxu0 %v3596_v8  ;;  %2191 = vmatpush1.bf16.msra.mxu1 %v3599_v10  ;;  %v3667_v8 = vld [vmem:[#allocation7 + $0x344] ss:$24 sps:$4 sm:$0xff]   ;;  %v3665_v10 = vld [vmem:[#allocation7 + $0x340] ss:$24 sps:$4 sm:$0xff]  }
 0x1c2   :  { %2110 = vmatprep.subr.bf16.mxu0 %v3604_v12  ;;  %2192 = vmatprep.subr.bf16.mxu1 %v3607_v13  ;;  %v3668_v12 = vld [vmem:[#allocation7 + $0x370] ss:$24 sps:$4 sm:$0xff]   ;;  %v3673_v13 = vld [vmem:[#allocation7 + $0x3a4] ss:$24 sps:$4 sm:$0xff]  }
 0x1c5   :  { %2111 = vmatpush1.bf16.msra.mxu0 %v3602_v14  ;;  %2193 = vmatpush1.bf16.msra.mxu1 %v3605_v16  ;;  %v3671_v14 = vld [vmem:[#allocation7 + $0x3a0] ss:$24 sps:$4 sm:$0xff]   ;;  %v3676_v16 = vld [vmem:[#allocation7 + $0x3d4] ss:$24 sps:$4 sm:$0xff]  }
 0x1c6   :  { %2112 = vmatprep.subr.bf16.mxu0 %v3610_v17  ;;  %2194 = vmatprep.subr.bf16.mxu1 %v3613_v18  ;;  %v3679_v17 = vld [vmem:[#allocation7 + $0x404] ss:$24 sps:$4 sm:$0xff]   ;;  %v3682_v18 = vld [vmem:[#allocation7 + $0x434] ss:$24 sps:$4 sm:$0xff]  }
 0x1c9   :  { %2113 = vmatpush1.bf16.msra.mxu0 %v3608_v19  ;;  %2195 = vmatpush1.bf16.msra.mxu1 %v3611_v20  ;;  %v3725_v19 = vld [vmem:[#allocation8 + $0x38] sm:$0xff]   ;;  %v3680_v20 = vld [vmem:[#allocation7 + $0x430] ss:$24 sps:$4 sm:$0xff]  }
 0x1ca   :  { %2205 = vmatprep.subr.bf16.mxu0 %v3616_v57  ;;  %3173 = vmatprep.subr.bf16.mxu1 %v3710_v15  ;;  %v3726_v57 = vld [vmem:[#allocation8 + $0xc0] sm:$0xff]   ;;  %v3686_v15 = vld [vmem:[#allocation7 + $0x490] ss:$24 sps:$4 sm:$0xff]  }
 0x1cc   :  { %2115 = vmatmul.mubr.bf16.vlgmr.msra.gmra.mrb[4].mxu0 %v4006_v23  ;;  %2197 = vmatmul.mubr.bf16.vlgmr.msra.gmra.mrb[4].mxu1 %v4006_v23 }
 0x1cd   :  { %2206 = vmatpush1.bf16.msra.mxu0 %v3614_v22  ;;  %2237 = vmatprep.mubr.bf16.mxu0 %v3988_v6  ;;  %v3628_v6 = vld [vmem:[#allocation7 + $0xd4] ss:$24 sps:$4 sm:$0xff]   ;;  %v3683_v22 = vld [vmem:[#allocation7 + $0x460] ss:$24 sps:$4 sm:$0xff]  }
 0x1ce   :  { %2207 = vmatprep.subr.bf16.mxu0 %v3619_v24  ;;  %3174 = vmatpush3.bf16.msra.mxu1 %v3711_v25  ;;  %v3688_v24 = vld [vmem:[#allocation7 + $0x494] ss:$24 sps:$4 sm:$0xff]   ;;  %v3691_v25 = vld [vmem:[#allocation7 + $0x4c4] ss:$24 sps:$4 sm:$0xff]  }
 0x1cf   :  { %3175 = vmatprep.subr.bf16.mxu1 %v3712_v26  ;;  %v3689_v26 = vld [vmem:[#allocation7 + $0x4c0] ss:$24 sps:$4 sm:$0xff]  }
 0x1d1   :  { %2208 = vmatpush1.bf16.msra.mxu0 %v3617_v28  ;;  %v3694_v28 = vld [vmem:[#allocation7 + $0x4f4] ss:$24 sps:$4 sm:$0xff]  }
 0x1d2   :  { %2209 = vmatprep.subr.bf16.mxu0 %v3622_v29  ;;  %3176 = vmatpush3.bf16.msra.mxu1 %v3713_v30  ;;  %v3692_v29 = vld [vmem:[#allocation7 + $0x4f0] ss:$24 sps:$4 sm:$0xff]   ;;  %v3697_v30 = vld [vmem:[#allocation7 + $0x524] ss:$24 sps:$4 sm:$0xff]  }
 0x1d3   :  { %3177 = vmatprep.subr.bf16.mxu1 %v3714_v31  ;;  %v3695_v31 = vld [vmem:[#allocation7 + $0x520] ss:$24 sps:$4 sm:$0xff]  }
 0x1d5   :  { %2210 = vmatpush1.bf16.msra.mxu0 %v3620_v32  ;;  %v3700_v32 = vld [vmem:[#allocation7 + $0x554] ss:$24 sps:$4 sm:$0xff]  }
 0x1d6   :  { %2211 = vmatprep.subr.bf16.mxu0 %v3625_v33  ;;  %3178 = vmatpush3.bf16.msra.mxu1 %v3715_v34  ;;  %v3698_v33 = vld [vmem:[#allocation7 + $0x550] ss:$24 sps:$4 sm:$0xff]   ;;  %v3703_v34 = vld [vmem:[#allocation7 + $0x584] ss:$24 sps:$4 sm:$0xff]  }
 0x1d7   :  { %3179 = vmatprep.subr.bf16.mxu1 %v3716_v35  ;;  %v3701_v35 = vld [vmem:[#allocation7 + $0x580] ss:$24 sps:$4 sm:$0xff]  }
 0x1d9   :  { %2212 = vmatpush1.bf16.msra.mxu0 %v3623_v36  ;;  %v3706_v36 = vld [vmem:[#allocation7 + $0x5b4] ss:$24 sps:$4 sm:$0xff]  }
 0x1da   :  { %2213 = vmatprep.subr.bf16.mxu0 %v3628_v6  ;;  %3180 = vmatpush3.bf16.msra.mxu1 %v3717_v37  ;;  %v3704_v6 = vld [vmem:[#allocation7 + $0x5b0] ss:$24 sps:$4 sm:$0xff]   ;;  %v3709_v37 = vld [vmem:[#allocation7 + $0x5e4] ss:$24 sps:$4 sm:$0xff]  }
 0x1db   :  { %3181 = vmatprep.subr.bf16.mxu1 %v3718_v38  ;;  %v3707_v38 = vld [vmem:[#allocation7 + $0x5e0] ss:$24 sps:$4 sm:$0xff]  }
 0x1dd   :  { %2214 = vmatpush1.bf16.msra.mxu0 %v3626_v39 }
 0x1de   :  { %2215 = vmatprep.subr.bf16.mxu0 %v3631_v40  ;;  %3182 = vmatpush3.bf16.msra.mxu1 %v3719_v41 }
 0x1df   :  { %3183 = vmatprep.subr.bf16.mxu1 %v3720_v42 }
 0x1e1   :  { %2216 = vmatpush1.bf16.msra.mxu0 %v3629_v43 }
 0x1e2   :  { %2217 = vmatprep.subr.bf16.mxu0 %v3634_v44  ;;  %3184 = vmatpush3.bf16.msra.mxu1 %v3721_v45 }
 0x1e3   :  { %3185 = vmatprep.subr.bf16.mxu1 %v3722_v46 }
 0x1e5   :  { %2218 = vmatpush1.bf16.msra.mxu0 %v3632_v47 }
 0x1e6   :  { %2219 = vmatprep.subr.bf16.mxu0 %v3637_v48  ;;  %3186 = vmatpush3.bf16.msra.mxu1 %v3723_v49 }
 0x1e9   :  { %2220 = vmatpush1.bf16.msra.mxu0 %v3635_v50 }
 0x1ea   :  { %2221 = vmatprep.subr.bf16.mxu0 %v3640_v51  ;;  %v3727_v51 = vld [vmem:[#allocation8 + $0x80] sm:$0xff]  }
 0x1ed   :  { %2222 = vmatpush1.bf16.msra.mxu0 %v3638_v52 }
 0x1ee   :  { %2223 = vmatprep.subr.bf16.mxu0 %v3643_v53  ;;  %v3728_v53 = vld [vmem:[#allocation8 + $0xc8] sm:$0xff]  }
 0x1f1   :  { %2224 = vmatpush1.bf16.msra.mxu0 %v3641_v54 }
 0x1f2   :  { %2225 = vmatprep.subr.bf16.mxu0 %v3646_v56  ;;  %v3730_v56 = vld [vmem:[#allocation8 + $0xd0] sm:$0xff]  }
 0x1f5   :  { %2226 = vmatpush1.bf16.msra.mxu0 %v3644_v58  ;;  %v3731_v58 = vld [vmem:[#allocation8 + $0x90] sm:$0xff]  }
 0x1f6   :  { %2227 = vmatprep.subr.bf16.mxu0 %v3649_v59  ;;  %v3732_v59 = vld [vmem:[#allocation8 + $0xd8] sm:$0xff]  }
 0x1f9   :  { %2228 = vmatpush1.bf16.msra.mxu0 %v3647_v60  ;;  %v3733_v60 = vld [vmem:[#allocation8 + $0x98] sm:$0xff]  }
 0x1fa   :  { %2229 = vmatprep.subr.bf16.mxu0 %v3652_v61  ;;  %v3734_v61 = vld [vmem:[#allocation8 + $0xe0] sm:$0xff]  }
 0x1fd   :  { %2230 = vmatpush1.bf16.msra.mxu0 %v3650_v62  ;;  %v3735_v62 = vld [vmem:[#allocation8 + $0xa0] sm:$0xff]  }
 0x1fe   :  { %2231 = vmatprep.subr.bf16.mxu0 %v3655_v63  ;;  %v3736_v63 = vld [vmem:[#allocation8 + $0xe8] sm:$0xff]  }
 0x201   :  { %2232 = vmatpush1.bf16.msra.mxu0 %v3653_v0  ;;  %v3737_v0 = vld [vmem:[#allocation8 + $0xa8] sm:$0xff]  }
 0x202   :  { %2233 = vmatprep.subr.bf16.mxu0 %v3658_v1  ;;  %v3738_v1 = vld [vmem:[#allocation8 + $0xf0] sm:$0xff]  }
 0x205   :  { %2234 = vmatpush1.bf16.msra.mxu0 %v3656_v2  ;;  %v3739_v2 = vld [vmem:[#allocation8 + $0xb0] sm:$0xff]  }
 0x206   :  { %2235 = vmatprep.subr.bf16.mxu0 %v3661_v3  ;;  %v3740_v3 = vld [vmem:[#allocation8 + $0xf8] sm:$0xff]  }
 0x209   :  { %2236 = vmatpush1.bf16.msra.mxu0 %v3659_v4  ;;  %v3741_v4 = vld [vmem:[#allocation8 + $0xb8] sm:$0xff]  }
 0x20a   :  { %2246 = vmatprep.subr.bf16.mxu0 %v3664_v5 }
 0x20c   :  { %2238 = vmatmul.mubr.bf16.vlgmr.msra.gmra.mrb[8].mxu0 %v3990_v9  ;;  %v3677_v9 = vld [vmem:[#allocation7 + $0x400] ss:$24 sps:$4 sm:$0xff]  }
 0x20d   :  { %2247 = vmatpush1.bf16.msra.mxu0 %v3662_v7  ;;  %2278 = vmatprep.mubr.bf16.mxu0 %v3999_v27  ;;  %v3724_v27 = vld [vmem:[#allocation8 + $0x78] sm:$0xff]   ;;  %v3742_v7 = vld [vmem:[#allocation8 + $0x140] sm:$0xff]  }
 0x20e   :  { %2248 = vmatprep.subr.bf16.mxu0 %v3667_v8  ;;  %3187 = vmatprep.subr.bf16.mxu1 %v3724_v27  ;;  %v3743_v8 = vld [vmem:[#allocation8 + $0x100] sm:$0xff]   ;;  %v3753_v27 = vld [vmem:[#allocation8 + $0x128] sm:$0xff]  }
 0x20f   :  { %3188 = vmatpush3.bf16.msra.mxu1 %v3725_v19  ;;  %v3754_v19 = vld [vmem:[#allocation8 + $0x170] sm:$0xff]  }
 0x210   :  { %3195 = vmatprep.subr.bf16.mxu1 %v3726_v57  ;;  %v3757_v57 = vld [vmem:[#allocation8 + $0x138] sm:$0xff]  }
 0x211   :  { %2249 = vmatpush1.bf16.msra.mxu0 %v3665_v10 }
 0x212   :  { %2250 = vmatprep.subr.bf16.mxu0 %v3670_v11  ;;  %v3744_v11 = vld [vmem:[#allocation8 + $0x148] sm:$0xff]  }
 0x215   :  { %2251 = vmatpush1.bf16.msra.mxu0 %v3668_v12  ;;  %v3745_v12 = vld [vmem:[#allocation8 + $0x108] sm:$0xff]  }
 0x216   :  { %2252 = vmatprep.subr.bf16.mxu0 %v3673_v13  ;;  %v3746_v13 = vld [vmem:[#allocation8 + $0x150] sm:$0xff]  }
 0x219   :  { %2253 = vmatpush1.bf16.msra.mxu0 %v3671_v14  ;;  %v3747_v14 = vld [vmem:[#allocation8 + $0x110] sm:$0xff]  }
 0x21a   :  { %2254 = vmatprep.subr.bf16.mxu0 %v3676_v16  ;;  %v3748_v16 = vld [vmem:[#allocation8 + $0x158] sm:$0xff]  }
 0x21d   :  { %2255 = vmatpush1.bf16.msra.mxu0 %v3674_v55  ;;  %v3749_v55 = vld [vmem:[#allocation8 + $0x118] sm:$0xff]  }
 0x21e   :  { %2256 = vmatprep.subr.bf16.mxu0 %v3679_v17  ;;  %v3750_v17 = vld [vmem:[#allocation8 + $0x160] sm:$0xff]  }
 0x221   :  { %2257 = vmatpush1.bf16.msra.mxu0 %v3677_v9  ;;  %v3751_v9 = vld [vmem:[#allocation8 + $0x120] sm:$0xff]  }
 0x222   :  { %2258 = vmatprep.subr.bf16.mxu0 %v3682_v18  ;;  %v3752_v18 = vld [vmem:[#allocation8 + $0x168] sm:$0xff]  }
 0x225   :  { %2259 = vmatpush1.bf16.msra.mxu0 %v3680_v20  ;;  %v3755_v20 = vld [vmem:[#allocation8 + $0x130] sm:$0xff]  }
 0x226   :  { %2260 = vmatprep.subr.bf16.mxu0 %v3685_v21  ;;  %v3756_v21 = vld [vmem:[#allocation8 + $0x178] sm:$0xff]  }
 0x229   :  { %2261 = vmatpush1.bf16.msra.mxu0 %v3683_v22 }
 0x22a   :  { %2262 = vmatprep.subr.bf16.mxu0 %v3688_v24 }
 0x22d   :  { %2263 = vmatpush1.bf16.msra.mxu0 %v3686_v15 }
 0x22e   :  { %2264 = vmatprep.subr.bf16.mxu0 %v3691_v25 }
 0x231   :  { %2265 = vmatpush1.bf16.msra.mxu0 %v3689_v26 }
 0x232   :  { %2266 = vmatprep.subr.bf16.mxu0 %v3694_v28 }
 0x235   :  { %2267 = vmatpush1.bf16.msra.mxu0 %v3692_v29 }
 0x236   :  { %2268 = vmatprep.subr.bf16.mxu0 %v3697_v30 }
 0x239   :  { %2269 = vmatpush1.bf16.msra.mxu0 %v3695_v31 }
 0x23a   :  { %2270 = vmatprep.subr.bf16.mxu0 %v3700_v32 }
 0x23d   :  { %2271 = vmatpush1.bf16.msra.mxu0 %v3698_v33 }
 0x23e   :  { %2272 = vmatprep.subr.bf16.mxu0 %v3703_v34 }
 0x241   :  { %2273 = vmatpush1.bf16.msra.mxu0 %v3701_v35 }
 0x242   :  { %2274 = vmatprep.subr.bf16.mxu0 %v3706_v36  ;;  %v3124_v36 = vld [vmem:[%s4034_s5] ss:$0 sm:$0xff] }
 0x245   :  { %2275 = vmatpush1.bf16.msra.mxu0 %v3704_v6 }
 0x246   :  { %2276 = vmatprep.subr.bf16.mxu0 %v3709_v37 }
 0x249   :  { %2277 = vmatpush1.bf16.msra.mxu0 %v3707_v38 }
 0x24c   :  { %2279 = vmatmul.mubr.bf16.vlgmr.msra.gmra.mrb[8].mxu0 %v4006_v23  ;;  %v3729_v23 = vld [vmem:[#allocation8 + $0x88] sm:$0xff]  }
 0x29f   :  { %v2116_v39 = vpop.f32.mrb[4].mxu0  ;;  %v2198_v40 = vpop.f32.mrb[4].mxu1 }
 0x2a0   :  { %v2287_v41 = vmax.f32 %v2116_v39, 0.0  ;;  %v2118_v42 = vpop.f32.mrb[5].mxu0  ;;  %v2200_v43 = vpop.f32.mrb[5].mxu1  ;;  %v2289_v5 = vmax.f32 %v2198_v40, 0.0 }
 0x2a1   :  { %v2288_v44 = vmax.f32 %v2118_v42, 0.0  ;;  %v2290_v45 = vmax.f32 %v2200_v43, 0.0  ;;  %v2120_v46 = vpop.f32.mrb[6].mxu0  ;;  %v2202_v47 = vpop.f32.mrb[6].mxu1 }
 0x2a2   :  { %v2121_v48 = vpop.f32.mrb[7].mxu0  ;;  %v2203_v49 = vpop.f32.mrb[7].mxu1  ;;  %v2293_v52 = vpack.c.bf16 %v2287_v41, %v2287_v41  ;;  %v2295_v10 = vpack.c.bf16 %v2289_v5, %v2289_v5 }
 0x2a3   :  { %v2294_v50 = vpack.c.bf16 %v2288_v44, %v2288_v44  ;;  %v2296_v54 = vpack.c.bf16 %v2290_v45, %v2290_v45 }
 0x2a5   :  { %2722 = vmatprep.mubr.bf16.mxu1 %v2294_v50 }
 0x2a6   :  { %2723 = vmatmul.mubr.bf16.vlgmr.msra.gmra.mrb[8].mxu1 %v2293_v52 }
 0x2a7   :  { %3196 = vmatpush3.bf16.msra.mxu1 %v3727_v51  ;;  %2762 = vmatprep.mubr.bf16.mxu1 %v2296_v54 }
 0x2a8   :  { %3197 = vmatprep.subr.bf16.mxu1 %v3728_v53 }
 0x2ab   :  { %3198 = vmatpush3.bf16.msra.mxu1 %v3729_v23 }
 0x2ac   :  { %3199 = vmatprep.subr.bf16.mxu1 %v3730_v56 }
 0x2af   :  { %3200 = vmatpush3.bf16.msra.mxu1 %v3731_v58 }
 0x2b0   :  { %3201 = vmatprep.subr.bf16.mxu1 %v3732_v59 }
 0x2b3   :  { %3202 = vmatpush3.bf16.msra.mxu1 %v3733_v60 }
 0x2b4   :  { %3203 = vmatprep.subr.bf16.mxu1 %v3734_v61 }
 0x2b7   :  { %3204 = vmatpush3.bf16.msra.mxu1 %v3735_v62 }
 0x2b8   :  { %3205 = vmatprep.subr.bf16.mxu1 %v3736_v63 }
 0x2bb   :  { %3206 = vmatpush3.bf16.msra.mxu1 %v3737_v0 }
 0x2bc   :  { %3207 = vmatprep.subr.bf16.mxu1 %v3738_v1 }
 0x2bf   :  { %3208 = vmatpush3.bf16.msra.mxu1 %v3739_v2 }
 0x2c0   :  { %3209 = vmatprep.subr.bf16.mxu1 %v3740_v3 }
 0x2c3   :  { %3210 = vmatpush3.bf16.msra.mxu1 %v3741_v4 }
 0x2c4   :  { %3217 = vmatprep.subr.bf16.mxu1 %v3742_v7 }
 0x2c6   :  { %2763 = vmatmul.mubr.bf16.vlgmr.msra.gmra.mrb[12].mxu1 %v2295_v10 }
 0x2c7   :  { %3218 = vmatpush3.bf16.msra.mxu1 %v3743_v8 }
 0x2c8   :  { %3219 = vmatprep.subr.bf16.mxu1 %v3744_v11 }
 0x2cb   :  { %3220 = vmatpush3.bf16.msra.mxu1 %v3745_v12 }
 0x2cc   :  { %3221 = vmatprep.subr.bf16.mxu1 %v3746_v13 }
 0x2cf   :  { %3222 = vmatpush3.bf16.msra.mxu1 %v3747_v14 }
 0x2d0   :  { %3223 = vmatprep.subr.bf16.mxu1 %v3748_v16 }
 0x2d3   :  { %3224 = vmatpush3.bf16.msra.mxu1 %v3749_v55 }
 0x2d4   :  { %3225 = vmatprep.subr.bf16.mxu1 %v3750_v17 }
 0x2d7   :  { %3226 = vmatpush3.bf16.msra.mxu1 %v3751_v9 }
 0x2d8   :  { %3227 = vmatprep.subr.bf16.mxu1 %v3752_v18 }
 0x2db   :  { %3228 = vmatpush3.bf16.msra.mxu1 %v3753_v27 }
 0x2dc   :  { %3229 = vmatprep.subr.bf16.mxu1 %v3754_v19 }
 0x2df   :  { %3230 = vmatpush3.bf16.msra.mxu1 %v3755_v20 }
 0x2e0   :  { %3231 = vmatprep.subr.bf16.mxu1 %v3756_v21 }
 0x2e3   :  { %3232 = vmatpush3.bf16.msra.mxu1 %v3757_v57 }
 0x31f   :  { %v2280_v22 = vpop.f32.mrb[8].mxu0 }
 0x320   :  { %v2291_v24 = vmax.f32 %v2280_v22, 0.0  ;;  %v2282_v15 = vpop.f32.mrb[9].mxu0 }
 0x321   :  { %v2292_v25 = vmax.f32 %v2282_v15, 0.0  ;;  %v2284_v26 = vpop.f32.mrb[10].mxu0 }
 0x322   :  { %v2285_v28 = vpop.f32.mrb[11].mxu0  ;;  %v2297_v30 = vpack.c.bf16 %v2291_v24, %v2291_v24 }
 0x323   :  { %v2298_v29 = vpack.c.bf16 %v2292_v25, %v2292_v25 }
 0x325   :  { %2802 = vmatprep.mubr.bf16.mxu1 %v2298_v29 }
 0x326   :  { %2803 = vmatmul.mubr.bf16.vlgmr.msra.gmra.mrb[16].mxu1 %v2297_v30 }
 0x379   :  { %v3189_v31 = vpop.f32.mrb[8].mxu1 }
 0x37a   :  { %v3190_v32 = vpop.f32.mrb[9].mxu1 }
 0x37b   :  { %v3191_v33 = vadd.f32 %v3190_v32, %v3189_v31  ;;  %v3192_v34 = vpop.f32.mrb[10].mxu1 }
 0x37c   :  { %v3193_v35 = vpop.f32.mrb[11].mxu1 }
 0x37d   :  { %v2725_v38 = vadd.f32 %v3191_v33, %v3124_v36 }
 0x399   :  { %v3211_v6 = vpop.f32.mrb[12].mxu1 }
 0x39a   :  { %v3212_v37 = vpop.f32.mrb[13].mxu1 }
 0x39b   :  { %v3213_v39 = vadd.f32 %v3212_v37, %v3211_v6  ;;  %v3214_v40 = vpop.f32.mrb[14].mxu1 }
 0x39c   :  { %v3215_v41 = vpop.f32.mrb[15].mxu1 }
 0x39d   :  { %v2765_v42 = vadd.f32 %v3213_v39, %v2725_v38 }
 0x3f9   :  { %v3233_v43 = vpop.f32.mrb[16].mxu1 }
 0x3fa   :  { %v3234_v44 = vpop.f32.mrb[17].mxu1 }
 0x3fb   :  { %v3235_v45 = vadd.f32 %v3234_v44, %v3233_v43  ;;  %v3236_v46 = vpop.f32.mrb[18].mxu1 }
 0x3fc   :  { %v3237_v47 = vpop.f32.mrb[19].mxu1 }
 0x3fd   :  { %v2805_v48 = vadd.f32 %v3235_v45, %v2765_v42 }
 0x3ff   :  { %2810 = vst [vmem:[#allocation10] sm:$0xff] %v2805_v48 }
 0x400   :  { %3857 = shalt.err (!%p3854_p8)
}
 0x401   :  { %s3858_s29 = scalar_lea.hbm %s4035_s6, 128 }
 0x402   :  { %p3859_p9 = scmp.ne.s32.totalorder %s4035_s6, %s3858_s29  ;;  %p3862_p10 = scmp.lt.u32.totalorder %s3858_s29, %s4035_s6 }
 0x404   :  { %p3864_p11 = pnand %p3862_p10, %p3859_p9 }
 0x406   :  { %3867 = shalt.err (!%p3864_p11)
}
 0x407   :  { %2820 = dma.vmem_to_hbm [thread:$0]  %s2818_s26, 128, %s4035_s6, [#allocation4]  }
 0x408   :  { %3874 = dma.done.wait [#allocation4], 128  }
 0x409   :  { %3875 = vsyncadd [#allocation4], 4294967168 }
 0x40a   :  { %2824 = vsyncpa [#allocation3], 1 }
 0x40b   :  { %2825 = vsyncpa [#allocation6], 1 }
 0x40c   :  { %2826 = vsyncpa [#allocation9], 1 }
 0x40d   :  { %2827 = vsyncpa [#allocation4], 1 }

</bundles_post_ra>
